<compile_context>
chip_gen: v5e
topology: v5e:2x2
jax: 0.10.0
libtpu: 0.0.40
codegen_flags: <defaults>
</compile_context>

<pallas_src>
import functools

import jax
import jax.numpy as jnp
from jax.experimental import pallas as pl
from jax.experimental.pallas import tpu as pltpu

_VMEM = pltpu.MemorySpace.VMEM


# ----------------------------------------------------------------------------
# in-kernel helpers (plain functions over traced values, all VMEM-resident)
# ----------------------------------------------------------------------------
def _bf16(x):
    return x if x.dtype == jnp.bfloat16 else x.astype(jnp.bfloat16)


def _mxu_dot(a, b):
    """MXU matmul: bf16 operands, fp32 accumulation."""
    return jnp.dot(_bf16(a), _bf16(b), preferred_element_type=jnp.float32)


def _scatter_add(onehot, msgs):
    """Segment-sum via one-hot: onehot (E,T), msgs (E,C) -> (T,C) on the MXU."""
    return jax.lax.dot_general(_bf16(onehot), _bf16(msgs),
                               (((0,), (0,)), ((), ())),
                               preferred_element_type=jnp.float32)


def _leaky_relu(x, slope=0.01):
    return jnp.where(x > 0, x, slope * x)


def _elu(x):
    # exp(min(x,0)) avoids overflow-to-inf on the unselected positive branch.
    return jnp.where(x > 0, x, jnp.exp(jnp.minimum(x, 0.0)) - 1.0)


def _segment_softmax_aggregate(a_j, a_i, msg, tgt_oh, bias):
    """GAT edge softmax over targets + weighted scatter-add + bias + elu.

    a_j,a_i: (E,1) attention halves; msg: (E,H); tgt_oh: (E,T) bf16; bias (1,H).
    Per-segment softmax is invariant to any constant shared inside a segment,
    so one GLOBAL max keeps exp args <= 0 with no (E,T) masked-max bookkeeping.
    A target with no incoming edges yields elu(bias) (matches PyG semantics).
    """
    logit = _leaky_relu(a_j + a_i)                              # (E, 1)
    lmax = jnp.max(logit, axis=0, keepdims=True)                # (1, 1) global max
    p = jnp.exp(logit - lmax)                                   # (E, 1), in (0, 1]
    denom = _scatter_add(tgt_oh, p)                             # (T, 1)  MXU
    edenom = _mxu_dot(tgt_oh, denom)                            # (E, 1)  gather denom, MXU
    alpha = p * pl.reciprocal(edenom, approx=True)              # segment softmax (EUP)
    agg = _scatter_add(tgt_oh, alpha * msg)                     # (T, H)  MXU
    return _elu(agg + bias)


def _gru_relu(h_in, h_prev, g, hidden):
    """PyTorch GRUCell with fused gate weights (columns [r|z|n]) + ReLU."""
    gi = _mxu_dot(h_in, g["wi"]) + g["bi"]                      # (., 3H)
    gh = _mxu_dot(h_prev, g["wh"]) + g["bh"]                    # (., 3H)
    r = jax.nn.sigmoid(gi[:, 0:hidden] + gh[:, 0:hidden])
    z = jax.nn.sigmoid(gi[:, hidden:2 * hidden] + gh[:, hidden:2 * hidden])
    n = jnp.tanh(gi[:, 2 * hidden:3 * hidden] + r * gh[:, 2 * hidden:3 * hidden])
    h_new = (1.0 - z) * n + z * h_prev
    return jnp.maximum(h_new, 0.0)  # AttentiveFP applies .relu_() after every GRU


# ----------------------------------------------------------------------------
# The single fused kernel: whole AttentiveFP forward, everything in VMEM.
# ----------------------------------------------------------------------------
def _afp_fused_kernel(*refs, treedef, n_in, n_mol_layers, hidden):
    out_ref = refs[n_in]
    leaves = [r[...] for r in refs[:n_in]]
    x, edge_attr, src_oh, tgt_oh, batch_oh, w = jax.tree_util.tree_unflatten(
        treedef, leaves)

    # 1) atom embedding: leaky_relu(lin1(x))
    h_node = _leaky_relu(_mxu_dot(x, w["lin1_w"]) + w["lin1_b"])           # (N, H)

    # 2) GATEConv (edge-attribute attention) + elu, then GRU + relu
    g = w["gate"]
    x_j = _mxu_dot(src_oh, h_node)                                         # gather src (E, H)
    # lin1([x_j || edge_attr]) split into two matmuls (no concat needed)
    xjt = _leaky_relu(_mxu_dot(x_j, g["lin1_wx"])
                      + _mxu_dot(edge_attr, g["lin1_we"]))                 # (E, H)
    a_j = _mxu_dot(xjt, g["att_l"])                                        # (E, 1) MXU matvec
    s_r = _mxu_dot(h_node, g["att_r"])                                     # (N, 1)
    a_i = _mxu_dot(tgt_oh, s_r)                                            # gather dst scalar (E, 1)
    msg = _mxu_dot(xjt, g["lin2_w"])                                       # (E, H)
    h = _segment_softmax_aggregate(a_j, a_i, msg, tgt_oh, g["bias"])       # (N, H)
    h_node = _gru_relu(h, h_node, w["gru0"], hidden)

    # 3) GATConv atom layers + GRU (unrolled at trace time)
    for lp in w["atom"]:
        wx = _mxu_dot(h_node, lp["w"])                                     # (N, H)
        scores = _mxu_dot(wx, lp["att_pair"])                              # (N, 2): [src | dst]
        a_j = _mxu_dot(src_oh, scores[:, 0:1])                             # (E, 1)
        a_i = _mxu_dot(tgt_oh, scores[:, 1:2])                             # (E, 1)
        wx_j = _mxu_dot(src_oh, wx)                                        # (E, H)
        h = _segment_softmax_aggregate(a_j, a_i, wx_j, tgt_oh, lp["bias"])
        h_node = _gru_relu(h, h_node, lp["gru"], hidden)

    # 4) molecule readout: global_add_pool + relu, then mol GATConv + GRU steps
    out = jnp.maximum(_scatter_add(batch_oh, h_node), 0.0)                 # (B, H)
    mp = w["mol"]
    # h_node does not change across mol timesteps -> hoist src-side work
    wx_src = _mxu_dot(h_node, mp["w"])                                     # (N, H)  loop-invariant
    a_src = _mxu_dot(wx_src, mp["att_src"])                                # (N, 1)  loop-invariant
    for _ in range(n_mol_layers):                                          # shared weights
        w_dst = _mxu_dot(out, mp["w"])                                     # (B, H)
        s_dst = _mxu_dot(w_dst, mp["att_dst"])                             # (B, 1)
        a_dst = _mxu_dot(batch_oh, s_dst)                                  # gather per node (N, 1)
        h_mol = _segment_softmax_aggregate(a_src, a_dst, wx_src, batch_oh, mp["bias"])
        out = _gru_relu(h_mol, out, mp["gru"], hidden)

    # 5) graph latent projection (return_lats=True), lane-padded -> dense store
    out_ref[...] = _mxu_dot(out, w["lin2_w"]) + w["lin2_b"]


def single_head_fragment_forward(params, n_mol_layers, x, edge_index, edge_attr,
                                 batch, num_graphs):
    N = x.shape[0]
    hidden = params["lin1_b"].shape[1]
    out_dim = params["lin2_w"].shape[1]
    out_pad = max(128, -(-out_dim // 128) * 128)   # lane-dense output width

    # bf16 one-hot gather/scatter matrices (values 0/1 are exact in bf16)
    src_oh = jax.nn.one_hot(edge_index[0], N, dtype=jnp.bfloat16)       # (E, N)
    tgt_oh = jax.nn.one_hot(edge_index[1], N, dtype=jnp.bfloat16)       # (E, N)
    batch_oh = jax.nn.one_hot(batch, num_graphs, dtype=jnp.bfloat16)    # (N, B)

    # lane-pad the final projection so the kernel's output store is unmasked
    w = dict(params)
    w["lin2_w"] = jnp.pad(params["lin2_w"].astype(jnp.float32),
                          ((0, 0), (0, out_pad - out_dim))).astype(jnp.bfloat16)
    w["lin2_b"] = jnp.pad(params["lin2_b"].astype(jnp.float32),
                          ((0, 0), (0, out_pad - out_dim)))

    operands = (x.astype(jnp.bfloat16), edge_attr.astype(jnp.bfloat16),
                src_oh, tgt_oh, batch_oh, w)
    flat, treedef = jax.tree_util.tree_flatten(operands)
    n_in = len(flat)

    # explicit scoped-VMEM budget sized from the real operand footprint
    out_bytes = num_graphs * out_pad * 4
    op_bytes = sum(int(a.size) * a.dtype.itemsize for a in flat) + out_bytes
    vmem_limit = int(min(100 * 2**20, max(16 * 2**20, 4 * op_bytes)))

    kernel = functools.partial(_afp_fused_kernel, treedef=treedef, n_in=n_in,
                               n_mol_layers=n_mol_layers, hidden=hidden)
    out_padded = pl.pallas_call(
        kernel,
        out_shape=jax.ShapeDtypeStruct((num_graphs, out_pad), jnp.float32),
        in_specs=[pl.BlockSpec(memory_space=_VMEM)] * n_in,
        out_specs=pl.BlockSpec(memory_space=_VMEM),
        compiler_params=pltpu.CompilerParams(vmem_limit_bytes=vmem_limit),
    )(*flat)
    return out_padded[:, :out_dim]


# ----------------------------------------------------------------------------
# Deterministic synthetic parameters (bf16 matmul weights, fp32 biases)
# ----------------------------------------------------------------------------
def init_params(key, node_in, edge_in, hidden, out_dim, n_atom_layers):
    keys = iter(jax.random.split(key, 256))

    def mat(shape, scale=0.1, dtype=jnp.bfloat16):
        return (scale * jax.random.normal(next(keys), shape)).astype(dtype)

    def gru_p():
        # fused gate weights, columns ordered [r | z | n] (PyTorch GRUCell layout)
        return dict(wi=mat((hidden, 3 * hidden)), wh=mat((hidden, 3 * hidden)),
                    bi=mat((1, 3 * hidden), dtype=jnp.float32),
                    bh=mat((1, 3 * hidden), dtype=jnp.float32))

    p = {}
    p["lin1_w"] = mat((node_in, hidden))
    p["lin1_b"] = mat((1, hidden), dtype=jnp.float32)
    p["gate"] = dict(lin1_wx=mat((hidden, hidden)), lin1_we=mat((edge_in, hidden)),
                     att_l=mat((hidden, 1)), att_r=mat((hidden, 1)),
                     lin2_w=mat((hidden, hidden)),
                     bias=mat((1, hidden), dtype=jnp.float32))
    p["gru0"] = gru_p()
    p["atom"] = [dict(w=mat((hidden, hidden)),
                      att_pair=mat((hidden, 2)),   # column 0 = att_src, 1 = att_dst
                      bias=mat((1, hidden), dtype=jnp.float32), gru=gru_p())
                 for _ in range(n_atom_layers - 1)]
    p["mol"] = dict(w=mat((hidden, hidden)),
                    att_src=mat((hidden, 1)), att_dst=mat((hidden, 1)),
                    bias=mat((1, hidden), dtype=jnp.float32), gru=gru_p())
    p["lin2_w"] = mat((hidden, out_dim), dtype=jnp.float32)
    p["lin2_b"] = mat((1, out_dim), dtype=jnp.float32)
    return p


# ----------------------------------------------------------------------------
if __name__ == "__main__":
    net_params = dict(node_in_dim=16, edge_in_dim=16, hidden_dim=32,
                      L2_layers_atom=2, L2_layers_mol=2,
                      L2_hidden_dim=16, dropout=0.0)

    key = jax.random.PRNGKey(0)
    k_x, k_e, k_p = jax.random.split(key, 3)

    # synthetic batched graph: 2 graphs, 8 nodes each, bidirectional ring edges
    num_graphs = 2
    nodes_per_graph = 8
    N = num_graphs * nodes_per_graph
    edges = []
    for gidx in range(num_graphs):
        off = gidx * nodes_per_graph
        for i in range(nodes_per_graph):
            a = off + i
            b = off + (i + 1) % nodes_per_graph
            edges.append((a, b))
            edges.append((b, a))
    edge_index = jnp.array(edges, dtype=jnp.int32).T               # (2, E)
    E = edge_index.shape[1]
    batch = jnp.repeat(jnp.arange(num_graphs, dtype=jnp.int32), nodes_per_graph)

    x = jax.random.normal(k_x, (N, net_params["node_in_dim"]), jnp.float32)
    edge_attr = jax.random.normal(k_e, (E, net_params["edge_in_dim"]), jnp.float32)

    params = init_params(
        k_p,
        node_in=net_params["node_in_dim"],
        edge_in=net_params["edge_in_dim"],
        hidden=net_params["hidden_dim"],
        out_dim=net_params["L2_hidden_dim"],
        n_atom_layers=net_params["L2_layers_atom"],
    )

    lats = single_head_fragment_forward(
        params, net_params["L2_layers_mol"], x, edge_index, edge_attr,
        batch, num_graphs)
    lats = jax.block_until_ready(lats)

    assert lats.shape == (num_graphs, net_params["L2_hidden_dim"]), lats.shape
    assert bool(jnp.all(jnp.isfinite(lats)))
    print("KERNEL_OK")
</pallas_src>

<mosaic_0001>
module attributes {stable_mosaic.version = 11 : i64} {
  func.func @_afp_fused_kernel(%arg0: memref<16x16xbf16, #tpu.memory_space<vmem>>, %arg1: memref<32x16xbf16, #tpu.memory_space<vmem>>, %arg2: memref<32x16xbf16, #tpu.memory_space<vmem>>, %arg3: memref<32x16xbf16, #tpu.memory_space<vmem>>, %arg4: memref<16x2xbf16, #tpu.memory_space<vmem>>, %arg5: memref<32x2xbf16, #tpu.memory_space<vmem>>, %arg6: memref<1x32xf32, #tpu.memory_space<vmem>>, %arg7: memref<1x96xf32, #tpu.memory_space<vmem>>, %arg8: memref<1x96xf32, #tpu.memory_space<vmem>>, %arg9: memref<32x96xbf16, #tpu.memory_space<vmem>>, %arg10: memref<32x96xbf16, #tpu.memory_space<vmem>>, %arg11: memref<32x32xbf16, #tpu.memory_space<vmem>>, %arg12: memref<32x1xbf16, #tpu.memory_space<vmem>>, %arg13: memref<32x1xbf16, #tpu.memory_space<vmem>>, %arg14: memref<1x32xf32, #tpu.memory_space<vmem>>, %arg15: memref<16x32xbf16, #tpu.memory_space<vmem>>, %arg16: memref<32x32xbf16, #tpu.memory_space<vmem>>, %arg17: memref<32x32xbf16, #tpu.memory_space<vmem>>, %arg18: memref<1x96xf32, #tpu.memory_space<vmem>>, %arg19: memref<1x96xf32, #tpu.memory_space<vmem>>, %arg20: memref<32x96xbf16, #tpu.memory_space<vmem>>, %arg21: memref<32x96xbf16, #tpu.memory_space<vmem>>, %arg22: memref<1x32xf32, #tpu.memory_space<vmem>>, %arg23: memref<16x32xbf16, #tpu.memory_space<vmem>>, %arg24: memref<1x128xf32, #tpu.memory_space<vmem>>, %arg25: memref<32x128xbf16, #tpu.memory_space<vmem>>, %arg26: memref<32x1xbf16, #tpu.memory_space<vmem>>, %arg27: memref<32x1xbf16, #tpu.memory_space<vmem>>, %arg28: memref<1x32xf32, #tpu.memory_space<vmem>>, %arg29: memref<1x96xf32, #tpu.memory_space<vmem>>, %arg30: memref<1x96xf32, #tpu.memory_space<vmem>>, %arg31: memref<32x96xbf16, #tpu.memory_space<vmem>>, %arg32: memref<32x96xbf16, #tpu.memory_space<vmem>>, %arg33: memref<32x32xbf16, #tpu.memory_space<vmem>>, %arg34: memref<2x128xf32, #tpu.memory_space<vmem>>) attributes {dimension_semantics = [], scalar_prefetch = 0 : i64, scratch_operands = 0 : i64, tpu.core_type = #tpu.core_type<tc>} {
    %c0 = arith.constant 0 : index
    %c0_0 = arith.constant 0 : index
    %0 = vector.load %arg0[%c0, %c0_0] : memref<16x16xbf16, #tpu.memory_space<vmem>>, vector<16x16xbf16>
    %c0_1 = arith.constant 0 : index
    %c0_2 = arith.constant 0 : index
    %1 = vector.load %arg1[%c0_1, %c0_2] : memref<32x16xbf16, #tpu.memory_space<vmem>>, vector<32x16xbf16>
    %c0_3 = arith.constant 0 : index
    %c0_4 = arith.constant 0 : index
    %2 = vector.load %arg2[%c0_3, %c0_4] : memref<32x16xbf16, #tpu.memory_space<vmem>>, vector<32x16xbf16>
    %c0_5 = arith.constant 0 : index
    %c0_6 = arith.constant 0 : index
    %3 = vector.load %arg3[%c0_5, %c0_6] : memref<32x16xbf16, #tpu.memory_space<vmem>>, vector<32x16xbf16>
    %c0_7 = arith.constant 0 : index
    %c0_8 = arith.constant 0 : index
    %4 = vector.load %arg4[%c0_7, %c0_8] : memref<16x2xbf16, #tpu.memory_space<vmem>>, vector<16x2xbf16>
    %c0_9 = arith.constant 0 : index
    %c0_10 = arith.constant 0 : index
    %5 = vector.load %arg5[%c0_9, %c0_10] : memref<32x2xbf16, #tpu.memory_space<vmem>>, vector<32x2xbf16>
    %c0_11 = arith.constant 0 : index
    %c0_12 = arith.constant 0 : index
    %6 = vector.load %arg6[%c0_11, %c0_12] : memref<1x32xf32, #tpu.memory_space<vmem>>, vector<1x32xf32>
    %c0_13 = arith.constant 0 : index
    %c0_14 = arith.constant 0 : index
    %7 = vector.load %arg7[%c0_13, %c0_14] : memref<1x96xf32, #tpu.memory_space<vmem>>, vector<1x96xf32>
    %c0_15 = arith.constant 0 : index
    %c0_16 = arith.constant 0 : index
    %8 = vector.load %arg8[%c0_15, %c0_16] : memref<1x96xf32, #tpu.memory_space<vmem>>, vector<1x96xf32>
    %c0_17 = arith.constant 0 : index
    %c0_18 = arith.constant 0 : index
    %9 = vector.load %arg9[%c0_17, %c0_18] : memref<32x96xbf16, #tpu.memory_space<vmem>>, vector<32x96xbf16>
    %c0_19 = arith.constant 0 : index
    %c0_20 = arith.constant 0 : index
    %10 = vector.load %arg10[%c0_19, %c0_20] : memref<32x96xbf16, #tpu.memory_space<vmem>>, vector<32x96xbf16>
    %c0_21 = arith.constant 0 : index
    %c0_22 = arith.constant 0 : index
    %11 = vector.load %arg11[%c0_21, %c0_22] : memref<32x32xbf16, #tpu.memory_space<vmem>>, vector<32x32xbf16>
    %c0_23 = arith.constant 0 : index
    %c0_24 = arith.constant 0 : index
    %12 = vector.load %arg12[%c0_23, %c0_24] : memref<32x1xbf16, #tpu.memory_space<vmem>>, vector<32x1xbf16>
    %c0_25 = arith.constant 0 : index
    %c0_26 = arith.constant 0 : index
    %13 = vector.load %arg13[%c0_25, %c0_26] : memref<32x1xbf16, #tpu.memory_space<vmem>>, vector<32x1xbf16>
    %c0_27 = arith.constant 0 : index
    %c0_28 = arith.constant 0 : index
    %14 = vector.load %arg14[%c0_27, %c0_28] : memref<1x32xf32, #tpu.memory_space<vmem>>, vector<1x32xf32>
    %c0_29 = arith.constant 0 : index
    %c0_30 = arith.constant 0 : index
    %15 = vector.load %arg15[%c0_29, %c0_30] : memref<16x32xbf16, #tpu.memory_space<vmem>>, vector<16x32xbf16>
    %c0_31 = arith.constant 0 : index
    %c0_32 = arith.constant 0 : index
    %16 = vector.load %arg16[%c0_31, %c0_32] : memref<32x32xbf16, #tpu.memory_space<vmem>>, vector<32x32xbf16>
    %c0_33 = arith.constant 0 : index
    %c0_34 = arith.constant 0 : index
    %17 = vector.load %arg17[%c0_33, %c0_34] : memref<32x32xbf16, #tpu.memory_space<vmem>>, vector<32x32xbf16>
    %c0_35 = arith.constant 0 : index
    %c0_36 = arith.constant 0 : index
    %18 = vector.load %arg18[%c0_35, %c0_36] : memref<1x96xf32, #tpu.memory_space<vmem>>, vector<1x96xf32>
    %c0_37 = arith.constant 0 : index
    %c0_38 = arith.constant 0 : index
    %19 = vector.load %arg19[%c0_37, %c0_38] : memref<1x96xf32, #tpu.memory_space<vmem>>, vector<1x96xf32>
    %c0_39 = arith.constant 0 : index
    %c0_40 = arith.constant 0 : index
    %20 = vector.load %arg20[%c0_39, %c0_40] : memref<32x96xbf16, #tpu.memory_space<vmem>>, vector<32x96xbf16>
    %c0_41 = arith.constant 0 : index
    %c0_42 = arith.constant 0 : index
    %21 = vector.load %arg21[%c0_41, %c0_42] : memref<32x96xbf16, #tpu.memory_space<vmem>>, vector<32x96xbf16>
    %c0_43 = arith.constant 0 : index
    %c0_44 = arith.constant 0 : index
    %22 = vector.load %arg22[%c0_43, %c0_44] : memref<1x32xf32, #tpu.memory_space<vmem>>, vector<1x32xf32>
    %c0_45 = arith.constant 0 : index
    %c0_46 = arith.constant 0 : index
    %23 = vector.load %arg23[%c0_45, %c0_46] : memref<16x32xbf16, #tpu.memory_space<vmem>>, vector<16x32xbf16>
    %c0_47 = arith.constant 0 : index
    %c0_48 = arith.constant 0 : index
    %24 = vector.load %arg24[%c0_47, %c0_48] : memref<1x128xf32, #tpu.memory_space<vmem>>, vector<1x128xf32>
    %c0_49 = arith.constant 0 : index
    %c0_50 = arith.constant 0 : index
    %25 = vector.load %arg25[%c0_49, %c0_50] : memref<32x128xbf16, #tpu.memory_space<vmem>>, vector<32x128xbf16>
    %c0_51 = arith.constant 0 : index
    %c0_52 = arith.constant 0 : index
    %26 = vector.load %arg26[%c0_51, %c0_52] : memref<32x1xbf16, #tpu.memory_space<vmem>>, vector<32x1xbf16>
    %c0_53 = arith.constant 0 : index
    %c0_54 = arith.constant 0 : index
    %27 = vector.load %arg27[%c0_53, %c0_54] : memref<32x1xbf16, #tpu.memory_space<vmem>>, vector<32x1xbf16>
    %c0_55 = arith.constant 0 : index
    %c0_56 = arith.constant 0 : index
    %28 = vector.load %arg28[%c0_55, %c0_56] : memref<1x32xf32, #tpu.memory_space<vmem>>, vector<1x32xf32>
    %c0_57 = arith.constant 0 : index
    %c0_58 = arith.constant 0 : index
    %29 = vector.load %arg29[%c0_57, %c0_58] : memref<1x96xf32, #tpu.memory_space<vmem>>, vector<1x96xf32>
    %c0_59 = arith.constant 0 : index
    %c0_60 = arith.constant 0 : index
    %30 = vector.load %arg30[%c0_59, %c0_60] : memref<1x96xf32, #tpu.memory_space<vmem>>, vector<1x96xf32>
    %c0_61 = arith.constant 0 : index
    %c0_62 = arith.constant 0 : index
    %31 = vector.load %arg31[%c0_61, %c0_62] : memref<32x96xbf16, #tpu.memory_space<vmem>>, vector<32x96xbf16>
    %c0_63 = arith.constant 0 : index
    %c0_64 = arith.constant 0 : index
    %32 = vector.load %arg32[%c0_63, %c0_64] : memref<32x96xbf16, #tpu.memory_space<vmem>>, vector<32x96xbf16>
    %c0_65 = arith.constant 0 : index
    %c0_66 = arith.constant 0 : index
    %33 = vector.load %arg33[%c0_65, %c0_66] : memref<32x32xbf16, #tpu.memory_space<vmem>>, vector<32x32xbf16>
    %cst = arith.constant dense<0.000000e+00> : vector<16x32xf32>
    %34 = tpu.matmul %0, %23, %cst {dimension_numbers = #tpu.dot_dimension_numbers<[1], [0], [0], [1], [0, 0, 1, 1], [], []>} : vector<16x16xbf16>, vector<16x32xbf16>, vector<16x32xf32> -> vector<16x32xf32>
    %35 = vector.broadcast %22 : vector<1x32xf32> to vector<16x32xf32>
    %36 = arith.addf %34, %35 : vector<16x32xf32>
    %cst_67 = arith.constant 0.000000e+00 : f32
    %37 = vector.broadcast %cst_67 : f32 to vector<16x32xf32>
    %38 = arith.cmpf ogt, %36, %37 : vector<16x32xf32>
    %cst_68 = arith.constant 0.00999999977 : f32
    %39 = vector.broadcast %cst_68 : f32 to vector<16x32xf32>
    %40 = arith.mulf %39, %36 : vector<16x32xf32>
    %41 = arith.select %38, %36, %40 : vector<16x32xi1>, vector<16x32xf32>
    %42 = arith.truncf %41 : vector<16x32xf32> to vector<16x32xbf16>
    %cst_69 = arith.constant dense<0.000000e+00> : vector<32x32xf32>
    %43 = tpu.matmul %2, %42, %cst_69 {dimension_numbers = #tpu.dot_dimension_numbers<[1], [0], [0], [1], [0, 0, 1, 1], [], []>} : vector<32x16xbf16>, vector<16x32xbf16>, vector<32x32xf32> -> vector<32x32xf32>
    %44 = arith.truncf %43 : vector<32x32xf32> to vector<32x32xbf16>
    %cst_70 = arith.constant dense<0.000000e+00> : vector<32x32xf32>
    %45 = tpu.matmul %44, %16, %cst_70 {dimension_numbers = #tpu.dot_dimension_numbers<[1], [0], [0], [1], [0, 0, 1, 1], [], []>} : vector<32x32xbf16>, vector<32x32xbf16>, vector<32x32xf32> -> vector<32x32xf32>
    %cst_71 = arith.constant dense<0.000000e+00> : vector<32x32xf32>
    %46 = tpu.matmul %1, %15, %cst_71 {dimension_numbers = #tpu.dot_dimension_numbers<[1], [0], [0], [1], [0, 0, 1, 1], [], []>} : vector<32x16xbf16>, vector<16x32xbf16>, vector<32x32xf32> -> vector<32x32xf32>
    %47 = arith.addf %45, %46 : vector<32x32xf32>
    %cst_72 = arith.constant 0.000000e+00 : f32
    %48 = vector.broadcast %cst_72 : f32 to vector<32x32xf32>
    %49 = arith.cmpf ogt, %47, %48 : vector<32x32xf32>
    %cst_73 = arith.constant 0.00999999977 : f32
    %50 = vector.broadcast %cst_73 : f32 to vector<32x32xf32>
    %51 = arith.mulf %50, %47 : vector<32x32xf32>
    %52 = arith.select %49, %47, %51 : vector<32x32xi1>, vector<32x32xf32>
    %53 = arith.truncf %52 : vector<32x32xf32> to vector<32x32xbf16>
    %cst_74 = arith.constant dense<0.000000e+00> : vector<32x1xf32>
    %54 = tpu.matmul %53, %12, %cst_74 {dimension_numbers = #tpu.dot_dimension_numbers<[1], [0], [0], [1], [0, 0, 1, 1], [], []>} : vector<32x32xbf16>, vector<32x1xbf16>, vector<32x1xf32> -> vector<32x1xf32>
    %55 = arith.truncf %41 : vector<16x32xf32> to vector<16x32xbf16>
    %cst_75 = arith.constant dense<0.000000e+00> : vector<16x1xf32>
    %56 = tpu.matmul %55, %13, %cst_75 {dimension_numbers = #tpu.dot_dimension_numbers<[1], [0], [0], [1], [0, 0, 1, 1], [], []>} : vector<16x32xbf16>, vector<32x1xbf16>, vector<16x1xf32> -> vector<16x1xf32>
    %57 = arith.truncf %56 : vector<16x1xf32> to vector<16x1xbf16>
    %cst_76 = arith.constant dense<0.000000e+00> : vector<32x1xf32>
    %58 = tpu.matmul %3, %57, %cst_76 {dimension_numbers = #tpu.dot_dimension_numbers<[1], [0], [0], [1], [0, 0, 1, 1], [], []>} : vector<32x16xbf16>, vector<16x1xbf16>, vector<32x1xf32> -> vector<32x1xf32>
    %59 = arith.truncf %52 : vector<32x32xf32> to vector<32x32xbf16>
    %cst_77 = arith.constant dense<0.000000e+00> : vector<32x32xf32>
    %60 = tpu.matmul %59, %17, %cst_77 {dimension_numbers = #tpu.dot_dimension_numbers<[1], [0], [0], [1], [0, 0, 1, 1], [], []>} : vector<32x32xbf16>, vector<32x32xbf16>, vector<32x32xf32> -> vector<32x32xf32>
    %61 = arith.addf %54, %58 : vector<32x1xf32>
    %cst_78 = arith.constant 0.000000e+00 : f32
    %62 = vector.broadcast %cst_78 : f32 to vector<32x1xf32>
    %63 = arith.cmpf ogt, %61, %62 : vector<32x1xf32>
    %cst_79 = arith.constant 0.00999999977 : f32
    %64 = vector.broadcast %cst_79 : f32 to vector<32x1xf32>
    %65 = arith.mulf %64, %61 : vector<32x1xf32>
    %66 = arith.select %63, %61, %65 : vector<32x1xi1>, vector<32x1xf32>
    %cst_80 = arith.constant dense<0xFF800000> : vector<1xf32>
    %67 = vector.multi_reduction <maximumf>, %66, %cst_80 [0] : vector<32x1xf32> to vector<1xf32>
    %68 = vector.shape_cast %67 : vector<1xf32> to vector<1x1xf32>
    %69 = vector.broadcast %68 : vector<1x1xf32> to vector<32x1xf32>
    %70 = arith.subf %66, %69 : vector<32x1xf32>
    %71 = math.exp %70 : vector<32x1xf32>
    %72 = arith.truncf %71 : vector<32x1xf32> to vector<32x1xbf16>
    %cst_81 = arith.constant dense<0.000000e+00> : vector<16x1xf32>
    %73 = tpu.matmul %3, %72, %cst_81 {dimension_numbers = #tpu.dot_dimension_numbers<[0], [0], [1], [1], [0, 1, 1, 1], [], []>} : vector<32x16xbf16>, vector<32x1xbf16>, vector<16x1xf32> -> vector<16x1xf32>
    %74 = arith.truncf %73 : vector<16x1xf32> to vector<16x1xbf16>
    %cst_82 = arith.constant dense<0.000000e+00> : vector<32x1xf32>
    %75 = tpu.matmul %3, %74, %cst_82 {dimension_numbers = #tpu.dot_dimension_numbers<[1], [0], [0], [1], [0, 0, 1, 1], [], []>} : vector<32x16xbf16>, vector<16x1xbf16>, vector<32x1xf32> -> vector<32x1xf32>
    %76 = tpu.reciprocal %75 {approx = true} : vector<32x1xf32> -> vector<32x1xf32>
    %77 = arith.mulf %71, %76 : vector<32x1xf32>
    %78 = vector.broadcast %77 : vector<32x1xf32> to vector<32x32xf32>
    %79 = arith.mulf %78, %60 : vector<32x32xf32>
    %80 = arith.truncf %79 : vector<32x32xf32> to vector<32x32xbf16>
    %cst_83 = arith.constant dense<0.000000e+00> : vector<16x32xf32>
    %81 = tpu.matmul %3, %80, %cst_83 {dimension_numbers = #tpu.dot_dimension_numbers<[0], [0], [1], [1], [0, 1, 1, 1], [], []>} : vector<32x16xbf16>, vector<32x32xbf16>, vector<16x32xf32> -> vector<16x32xf32>
    %82 = vector.broadcast %14 : vector<1x32xf32> to vector<16x32xf32>
    %83 = arith.addf %81, %82 : vector<16x32xf32>
    %cst_84 = arith.constant 0.000000e+00 : f32
    %84 = vector.broadcast %cst_84 : f32 to vector<16x32xf32>
    %85 = arith.cmpf ogt, %83, %84 : vector<16x32xf32>
    %cst_85 = arith.constant 0.000000e+00 : f32
    %86 = vector.broadcast %cst_85 : f32 to vector<16x32xf32>
    %87 = arith.minimumf %83, %86 : vector<16x32xf32>
    %88 = math.exp %87 : vector<16x32xf32>
    %cst_86 = arith.constant 1.000000e+00 : f32
    %89 = vector.broadcast %cst_86 : f32 to vector<16x32xf32>
    %90 = arith.subf %88, %89 : vector<16x32xf32>
    %91 = arith.select %85, %83, %90 : vector<16x32xi1>, vector<16x32xf32>
    %92 = arith.truncf %91 : vector<16x32xf32> to vector<16x32xbf16>
    %cst_87 = arith.constant dense<0.000000e+00> : vector<16x96xf32>
    %93 = tpu.matmul %92, %21, %cst_87 {dimension_numbers = #tpu.dot_dimension_numbers<[1], [0], [0], [1], [0, 0, 1, 1], [], []>} : vector<16x32xbf16>, vector<32x96xbf16>, vector<16x96xf32> -> vector<16x96xf32>
    %94 = vector.broadcast %19 : vector<1x96xf32> to vector<16x96xf32>
    %95 = arith.addf %93, %94 : vector<16x96xf32>
    %96 = arith.truncf %41 : vector<16x32xf32> to vector<16x32xbf16>
    %cst_88 = arith.constant dense<0.000000e+00> : vector<16x96xf32>
    %97 = tpu.matmul %96, %20, %cst_88 {dimension_numbers = #tpu.dot_dimension_numbers<[1], [0], [0], [1], [0, 0, 1, 1], [], []>} : vector<16x32xbf16>, vector<32x96xbf16>, vector<16x96xf32> -> vector<16x96xf32>
    %98 = vector.broadcast %18 : vector<1x96xf32> to vector<16x96xf32>
    %99 = arith.addf %97, %98 : vector<16x96xf32>
    %100 = vector.extract_strided_slice %95 {offsets = [0, 0], sizes = [16, 32], strides = [1, 1]} : vector<16x96xf32> to vector<16x32xf32>
    %101 = vector.extract_strided_slice %99 {offsets = [0, 0], sizes = [16, 32], strides = [1, 1]} : vector<16x96xf32> to vector<16x32xf32>
    %102 = arith.addf %100, %101 : vector<16x32xf32>
    %103 = arith.negf %102 : vector<16x32xf32>
    %104 = math.exp %103 : vector<16x32xf32>
    %cst_89 = arith.constant 1.000000e+00 : f32
    %105 = vector.broadcast %cst_89 : f32 to vector<16x32xf32>
    %106 = arith.addf %105, %104 : vector<16x32xf32>
    %107 = arith.divf %105, %106 : vector<16x32xf32>
    %108 = vector.extract_strided_slice %95 {offsets = [0, 32], sizes = [16, 32], strides = [1, 1]} : vector<16x96xf32> to vector<16x32xf32>
    %109 = vector.extract_strided_slice %99 {offsets = [0, 32], sizes = [16, 32], strides = [1, 1]} : vector<16x96xf32> to vector<16x32xf32>
    %110 = arith.addf %108, %109 : vector<16x32xf32>
    %111 = arith.negf %110 : vector<16x32xf32>
    %112 = math.exp %111 : vector<16x32xf32>
    %cst_90 = arith.constant 1.000000e+00 : f32
    %113 = vector.broadcast %cst_90 : f32 to vector<16x32xf32>
    %114 = arith.addf %113, %112 : vector<16x32xf32>
    %115 = arith.divf %113, %114 : vector<16x32xf32>
    %116 = vector.extract_strided_slice %95 {offsets = [0, 64], sizes = [16, 32], strides = [1, 1]} : vector<16x96xf32> to vector<16x32xf32>
    %117 = vector.extract_strided_slice %99 {offsets = [0, 64], sizes = [16, 32], strides = [1, 1]} : vector<16x96xf32> to vector<16x32xf32>
    %118 = arith.mulf %107, %117 : vector<16x32xf32>
    %119 = arith.addf %116, %118 : vector<16x32xf32>
    %120 = math.tanh %119 : vector<16x32xf32>
    %cst_91 = arith.constant 1.000000e+00 : f32
    %121 = vector.broadcast %cst_91 : f32 to vector<16x32xf32>
    %122 = arith.subf %121, %115 : vector<16x32xf32>
    %123 = arith.mulf %122, %120 : vector<16x32xf32>
    %124 = arith.mulf %115, %41 : vector<16x32xf32>
    %125 = arith.addf %123, %124 : vector<16x32xf32>
    %cst_92 = arith.constant 0.000000e+00 : f32
    %126 = vector.broadcast %cst_92 : f32 to vector<16x32xf32>
    %127 = arith.maximumf %125, %126 : vector<16x32xf32>
    %128 = arith.truncf %127 : vector<16x32xf32> to vector<16x32xbf16>
    %cst_93 = arith.constant dense<0.000000e+00> : vector<16x32xf32>
    %129 = tpu.matmul %128, %11, %cst_93 {dimension_numbers = #tpu.dot_dimension_numbers<[1], [0], [0], [1], [0, 0, 1, 1], [], []>} : vector<16x32xbf16>, vector<32x32xbf16>, vector<16x32xf32> -> vector<16x32xf32>
    %130 = arith.truncf %129 : vector<16x32xf32> to vector<16x32xbf16>
    %cst_94 = arith.constant dense<0.000000e+00> : vector<16x2xf32>
    %131 = tpu.matmul %130, %5, %cst_94 {dimension_numbers = #tpu.dot_dimension_numbers<[1], [0], [0], [1], [0, 0, 1, 1], [], []>} : vector<16x32xbf16>, vector<32x2xbf16>, vector<16x2xf32> -> vector<16x2xf32>
    %132 = vector.extract_strided_slice %131 {offsets = [0, 0], sizes = [16, 1], strides = [1, 1]} : vector<16x2xf32> to vector<16x1xf32>
    %133 = arith.truncf %132 : vector<16x1xf32> to vector<16x1xbf16>
    %cst_95 = arith.constant dense<0.000000e+00> : vector<32x1xf32>
    %134 = tpu.matmul %2, %133, %cst_95 {dimension_numbers = #tpu.dot_dimension_numbers<[1], [0], [0], [1], [0, 0, 1, 1], [], []>} : vector<32x16xbf16>, vector<16x1xbf16>, vector<32x1xf32> -> vector<32x1xf32>
    %135 = vector.extract_strided_slice %131 {offsets = [0, 1], sizes = [16, 1], strides = [1, 1]} : vector<16x2xf32> to vector<16x1xf32>
    %136 = arith.truncf %135 : vector<16x1xf32> to vector<16x1xbf16>
    %cst_96 = arith.constant dense<0.000000e+00> : vector<32x1xf32>
    %137 = tpu.matmul %3, %136, %cst_96 {dimension_numbers = #tpu.dot_dimension_numbers<[1], [0], [0], [1], [0, 0, 1, 1], [], []>} : vector<32x16xbf16>, vector<16x1xbf16>, vector<32x1xf32> -> vector<32x1xf32>
    %138 = arith.truncf %129 : vector<16x32xf32> to vector<16x32xbf16>
    %cst_97 = arith.constant dense<0.000000e+00> : vector<32x32xf32>
    %139 = tpu.matmul %2, %138, %cst_97 {dimension_numbers = #tpu.dot_dimension_numbers<[1], [0], [0], [1], [0, 0, 1, 1], [], []>} : vector<32x16xbf16>, vector<16x32xbf16>, vector<32x32xf32> -> vector<32x32xf32>
    %140 = arith.addf %134, %137 : vector<32x1xf32>
    %cst_98 = arith.constant 0.000000e+00 : f32
    %141 = vector.broadcast %cst_98 : f32 to vector<32x1xf32>
    %142 = arith.cmpf ogt, %140, %141 : vector<32x1xf32>
    %cst_99 = arith.constant 0.00999999977 : f32
    %143 = vector.broadcast %cst_99 : f32 to vector<32x1xf32>
    %144 = arith.mulf %143, %140 : vector<32x1xf32>
    %145 = arith.select %142, %140, %144 : vector<32x1xi1>, vector<32x1xf32>
    %cst_100 = arith.constant dense<0xFF800000> : vector<1xf32>
    %146 = vector.multi_reduction <maximumf>, %145, %cst_100 [0] : vector<32x1xf32> to vector<1xf32>
    %147 = vector.shape_cast %146 : vector<1xf32> to vector<1x1xf32>
    %148 = vector.broadcast %147 : vector<1x1xf32> to vector<32x1xf32>
    %149 = arith.subf %145, %148 : vector<32x1xf32>
    %150 = math.exp %149 : vector<32x1xf32>
    %151 = arith.truncf %150 : vector<32x1xf32> to vector<32x1xbf16>
    %cst_101 = arith.constant dense<0.000000e+00> : vector<16x1xf32>
    %152 = tpu.matmul %3, %151, %cst_101 {dimension_numbers = #tpu.dot_dimension_numbers<[0], [0], [1], [1], [0, 1, 1, 1], [], []>} : vector<32x16xbf16>, vector<32x1xbf16>, vector<16x1xf32> -> vector<16x1xf32>
    %153 = arith.truncf %152 : vector<16x1xf32> to vector<16x1xbf16>
    %cst_102 = arith.constant dense<0.000000e+00> : vector<32x1xf32>
    %154 = tpu.matmul %3, %153, %cst_102 {dimension_numbers = #tpu.dot_dimension_numbers<[1], [0], [0], [1], [0, 0, 1, 1], [], []>} : vector<32x16xbf16>, vector<16x1xbf16>, vector<32x1xf32> -> vector<32x1xf32>
    %155 = tpu.reciprocal %154 {approx = true} : vector<32x1xf32> -> vector<32x1xf32>
    %156 = arith.mulf %150, %155 : vector<32x1xf32>
    %157 = vector.broadcast %156 : vector<32x1xf32> to vector<32x32xf32>
    %158 = arith.mulf %157, %139 : vector<32x32xf32>
    %159 = arith.truncf %158 : vector<32x32xf32> to vector<32x32xbf16>
    %cst_103 = arith.constant dense<0.000000e+00> : vector<16x32xf32>
    %160 = tpu.matmul %3, %159, %cst_103 {dimension_numbers = #tpu.dot_dimension_numbers<[0], [0], [1], [1], [0, 1, 1, 1], [], []>} : vector<32x16xbf16>, vector<32x32xbf16>, vector<16x32xf32> -> vector<16x32xf32>
    %161 = vector.broadcast %6 : vector<1x32xf32> to vector<16x32xf32>
    %162 = arith.addf %160, %161 : vector<16x32xf32>
    %cst_104 = arith.constant 0.000000e+00 : f32
    %163 = vector.broadcast %cst_104 : f32 to vector<16x32xf32>
    %164 = arith.cmpf ogt, %162, %163 : vector<16x32xf32>
    %cst_105 = arith.constant 0.000000e+00 : f32
    %165 = vector.broadcast %cst_105 : f32 to vector<16x32xf32>
    %166 = arith.minimumf %162, %165 : vector<16x32xf32>
    %167 = math.exp %166 : vector<16x32xf32>
    %cst_106 = arith.constant 1.000000e+00 : f32
    %168 = vector.broadcast %cst_106 : f32 to vector<16x32xf32>
    %169 = arith.subf %167, %168 : vector<16x32xf32>
    %170 = arith.select %164, %162, %169 : vector<16x32xi1>, vector<16x32xf32>
    %171 = arith.truncf %170 : vector<16x32xf32> to vector<16x32xbf16>
    %cst_107 = arith.constant dense<0.000000e+00> : vector<16x96xf32>
    %172 = tpu.matmul %171, %10, %cst_107 {dimension_numbers = #tpu.dot_dimension_numbers<[1], [0], [0], [1], [0, 0, 1, 1], [], []>} : vector<16x32xbf16>, vector<32x96xbf16>, vector<16x96xf32> -> vector<16x96xf32>
    %173 = vector.broadcast %8 : vector<1x96xf32> to vector<16x96xf32>
    %174 = arith.addf %172, %173 : vector<16x96xf32>
    %175 = arith.truncf %127 : vector<16x32xf32> to vector<16x32xbf16>
    %cst_108 = arith.constant dense<0.000000e+00> : vector<16x96xf32>
    %176 = tpu.matmul %175, %9, %cst_108 {dimension_numbers = #tpu.dot_dimension_numbers<[1], [0], [0], [1], [0, 0, 1, 1], [], []>} : vector<16x32xbf16>, vector<32x96xbf16>, vector<16x96xf32> -> vector<16x96xf32>
    %177 = vector.broadcast %7 : vector<1x96xf32> to vector<16x96xf32>
    %178 = arith.addf %176, %177 : vector<16x96xf32>
    %179 = vector.extract_strided_slice %174 {offsets = [0, 0], sizes = [16, 32], strides = [1, 1]} : vector<16x96xf32> to vector<16x32xf32>
    %180 = vector.extract_strided_slice %178 {offsets = [0, 0], sizes = [16, 32], strides = [1, 1]} : vector<16x96xf32> to vector<16x32xf32>
    %181 = arith.addf %179, %180 : vector<16x32xf32>
    %182 = arith.negf %181 : vector<16x32xf32>
    %183 = math.exp %182 : vector<16x32xf32>
    %cst_109 = arith.constant 1.000000e+00 : f32
    %184 = vector.broadcast %cst_109 : f32 to vector<16x32xf32>
    %185 = arith.addf %184, %183 : vector<16x32xf32>
    %186 = arith.divf %184, %185 : vector<16x32xf32>
    %187 = vector.extract_strided_slice %174 {offsets = [0, 32], sizes = [16, 32], strides = [1, 1]} : vector<16x96xf32> to vector<16x32xf32>
    %188 = vector.extract_strided_slice %178 {offsets = [0, 32], sizes = [16, 32], strides = [1, 1]} : vector<16x96xf32> to vector<16x32xf32>
    %189 = arith.addf %187, %188 : vector<16x32xf32>
    %190 = arith.negf %189 : vector<16x32xf32>
    %191 = math.exp %190 : vector<16x32xf32>
    %cst_110 = arith.constant 1.000000e+00 : f32
    %192 = vector.broadcast %cst_110 : f32 to vector<16x32xf32>
    %193 = arith.addf %192, %191 : vector<16x32xf32>
    %194 = arith.divf %192, %193 : vector<16x32xf32>
    %195 = vector.extract_strided_slice %174 {offsets = [0, 64], sizes = [16, 32], strides = [1, 1]} : vector<16x96xf32> to vector<16x32xf32>
    %196 = vector.extract_strided_slice %178 {offsets = [0, 64], sizes = [16, 32], strides = [1, 1]} : vector<16x96xf32> to vector<16x32xf32>
    %197 = arith.mulf %186, %196 : vector<16x32xf32>
    %198 = arith.addf %195, %197 : vector<16x32xf32>
    %199 = math.tanh %198 : vector<16x32xf32>
    %cst_111 = arith.constant 1.000000e+00 : f32
    %200 = vector.broadcast %cst_111 : f32 to vector<16x32xf32>
    %201 = arith.subf %200, %194 : vector<16x32xf32>
    %202 = arith.mulf %201, %199 : vector<16x32xf32>
    %203 = arith.mulf %194, %127 : vector<16x32xf32>
    %204 = arith.addf %202, %203 : vector<16x32xf32>
    %cst_112 = arith.constant 0.000000e+00 : f32
    %205 = vector.broadcast %cst_112 : f32 to vector<16x32xf32>
    %206 = arith.maximumf %204, %205 : vector<16x32xf32>
    %207 = arith.truncf %206 : vector<16x32xf32> to vector<16x32xbf16>
    %cst_113 = arith.constant dense<0.000000e+00> : vector<2x32xf32>
    %208 = tpu.matmul %4, %207, %cst_113 {dimension_numbers = #tpu.dot_dimension_numbers<[0], [0], [1], [1], [0, 1, 1, 1], [], []>} : vector<16x2xbf16>, vector<16x32xbf16>, vector<2x32xf32> -> vector<2x32xf32>
    %cst_114 = arith.constant 0.000000e+00 : f32
    %209 = vector.broadcast %cst_114 : f32 to vector<2x32xf32>
    %210 = arith.maximumf %208, %209 : vector<2x32xf32>
    %211 = arith.truncf %206 : vector<16x32xf32> to vector<16x32xbf16>
    %cst_115 = arith.constant dense<0.000000e+00> : vector<16x32xf32>
    %212 = tpu.matmul %211, %33, %cst_115 {dimension_numbers = #tpu.dot_dimension_numbers<[1], [0], [0], [1], [0, 0, 1, 1], [], []>} : vector<16x32xbf16>, vector<32x32xbf16>, vector<16x32xf32> -> vector<16x32xf32>
    %213 = arith.truncf %212 : vector<16x32xf32> to vector<16x32xbf16>
    %cst_116 = arith.constant dense<0.000000e+00> : vector<16x1xf32>
    %214 = tpu.matmul %213, %27, %cst_116 {dimension_numbers = #tpu.dot_dimension_numbers<[1], [0], [0], [1], [0, 0, 1, 1], [], []>} : vector<16x32xbf16>, vector<32x1xbf16>, vector<16x1xf32> -> vector<16x1xf32>
    %215 = arith.truncf %210 : vector<2x32xf32> to vector<2x32xbf16>
    %cst_117 = arith.constant dense<0.000000e+00> : vector<2x32xf32>
    %216 = tpu.matmul %215, %33, %cst_117 {dimension_numbers = #tpu.dot_dimension_numbers<[1], [0], [0], [1], [0, 0, 1, 1], [], []>} : vector<2x32xbf16>, vector<32x32xbf16>, vector<2x32xf32> -> vector<2x32xf32>
    %217 = arith.truncf %216 : vector<2x32xf32> to vector<2x32xbf16>
    %cst_118 = arith.constant dense<0.000000e+00> : vector<2x1xf32>
    %218 = tpu.matmul %217, %26, %cst_118 {dimension_numbers = #tpu.dot_dimension_numbers<[1], [0], [0], [1], [0, 0, 1, 1], [], []>} : vector<2x32xbf16>, vector<32x1xbf16>, vector<2x1xf32> -> vector<2x1xf32>
    %219 = arith.truncf %218 : vector<2x1xf32> to vector<2x1xbf16>
    %cst_119 = arith.constant dense<0.000000e+00> : vector<16x1xf32>
    %220 = tpu.matmul %4, %219, %cst_119 {dimension_numbers = #tpu.dot_dimension_numbers<[1], [0], [0], [1], [0, 0, 1, 1], [], []>} : vector<16x2xbf16>, vector<2x1xbf16>, vector<16x1xf32> -> vector<16x1xf32>
    %221 = arith.addf %214, %220 : vector<16x1xf32>
    %cst_120 = arith.constant 0.000000e+00 : f32
    %222 = vector.broadcast %cst_120 : f32 to vector<16x1xf32>
    %223 = arith.cmpf ogt, %221, %222 : vector<16x1xf32>
    %cst_121 = arith.constant 0.00999999977 : f32
    %224 = vector.broadcast %cst_121 : f32 to vector<16x1xf32>
    %225 = arith.mulf %224, %221 : vector<16x1xf32>
    %226 = arith.select %223, %221, %225 : vector<16x1xi1>, vector<16x1xf32>
    %cst_122 = arith.constant dense<0xFF800000> : vector<1xf32>
    %227 = vector.multi_reduction <maximumf>, %226, %cst_122 [0] : vector<16x1xf32> to vector<1xf32>
    %228 = vector.shape_cast %227 : vector<1xf32> to vector<1x1xf32>
    %229 = vector.broadcast %228 : vector<1x1xf32> to vector<16x1xf32>
    %230 = arith.subf %226, %229 : vector<16x1xf32>
    %231 = math.exp %230 : vector<16x1xf32>
    %232 = arith.truncf %231 : vector<16x1xf32> to vector<16x1xbf16>
    %cst_123 = arith.constant dense<0.000000e+00> : vector<2x1xf32>
    %233 = tpu.matmul %4, %232, %cst_123 {dimension_numbers = #tpu.dot_dimension_numbers<[0], [0], [1], [1], [0, 1, 1, 1], [], []>} : vector<16x2xbf16>, vector<16x1xbf16>, vector<2x1xf32> -> vector<2x1xf32>
    %234 = arith.truncf %233 : vector<2x1xf32> to vector<2x1xbf16>
    %cst_124 = arith.constant dense<0.000000e+00> : vector<16x1xf32>
    %235 = tpu.matmul %4, %234, %cst_124 {dimension_numbers = #tpu.dot_dimension_numbers<[1], [0], [0], [1], [0, 0, 1, 1], [], []>} : vector<16x2xbf16>, vector<2x1xbf16>, vector<16x1xf32> -> vector<16x1xf32>
    %236 = tpu.reciprocal %235 {approx = true} : vector<16x1xf32> -> vector<16x1xf32>
    %237 = arith.mulf %231, %236 : vector<16x1xf32>
    %238 = vector.broadcast %237 : vector<16x1xf32> to vector<16x32xf32>
    %239 = arith.mulf %238, %212 : vector<16x32xf32>
    %240 = arith.truncf %239 : vector<16x32xf32> to vector<16x32xbf16>
    %cst_125 = arith.constant dense<0.000000e+00> : vector<2x32xf32>
    %241 = tpu.matmul %4, %240, %cst_125 {dimension_numbers = #tpu.dot_dimension_numbers<[0], [0], [1], [1], [0, 1, 1, 1], [], []>} : vector<16x2xbf16>, vector<16x32xbf16>, vector<2x32xf32> -> vector<2x32xf32>
    %242 = vector.broadcast %28 : vector<1x32xf32> to vector<2x32xf32>
    %243 = arith.addf %241, %242 : vector<2x32xf32>
    %cst_126 = arith.constant 0.000000e+00 : f32
    %244 = vector.broadcast %cst_126 : f32 to vector<2x32xf32>
    %245 = arith.cmpf ogt, %243, %244 : vector<2x32xf32>
    %cst_127 = arith.constant 0.000000e+00 : f32
    %246 = vector.broadcast %cst_127 : f32 to vector<2x32xf32>
    %247 = arith.minimumf %243, %246 : vector<2x32xf32>
    %248 = math.exp %247 : vector<2x32xf32>
    %cst_128 = arith.constant 1.000000e+00 : f32
    %249 = vector.broadcast %cst_128 : f32 to vector<2x32xf32>
    %250 = arith.subf %248, %249 : vector<2x32xf32>
    %251 = arith.select %245, %243, %250 : vector<2x32xi1>, vector<2x32xf32>
    %252 = arith.truncf %251 : vector<2x32xf32> to vector<2x32xbf16>
    %cst_129 = arith.constant dense<0.000000e+00> : vector<2x96xf32>
    %253 = tpu.matmul %252, %32, %cst_129 {dimension_numbers = #tpu.dot_dimension_numbers<[1], [0], [0], [1], [0, 0, 1, 1], [], []>} : vector<2x32xbf16>, vector<32x96xbf16>, vector<2x96xf32> -> vector<2x96xf32>
    %254 = vector.broadcast %30 : vector<1x96xf32> to vector<2x96xf32>
    %255 = arith.addf %253, %254 : vector<2x96xf32>
    %256 = arith.truncf %210 : vector<2x32xf32> to vector<2x32xbf16>
    %cst_130 = arith.constant dense<0.000000e+00> : vector<2x96xf32>
    %257 = tpu.matmul %256, %31, %cst_130 {dimension_numbers = #tpu.dot_dimension_numbers<[1], [0], [0], [1], [0, 0, 1, 1], [], []>} : vector<2x32xbf16>, vector<32x96xbf16>, vector<2x96xf32> -> vector<2x96xf32>
    %258 = vector.broadcast %29 : vector<1x96xf32> to vector<2x96xf32>
    %259 = arith.addf %257, %258 : vector<2x96xf32>
    %260 = vector.extract_strided_slice %255 {offsets = [0, 0], sizes = [2, 32], strides = [1, 1]} : vector<2x96xf32> to vector<2x32xf32>
    %261 = vector.extract_strided_slice %259 {offsets = [0, 0], sizes = [2, 32], strides = [1, 1]} : vector<2x96xf32> to vector<2x32xf32>
    %262 = arith.addf %260, %261 : vector<2x32xf32>
    %263 = arith.negf %262 : vector<2x32xf32>
    %264 = math.exp %263 : vector<2x32xf32>
    %cst_131 = arith.constant 1.000000e+00 : f32
    %265 = vector.broadcast %cst_131 : f32 to vector<2x32xf32>
    %266 = arith.addf %265, %264 : vector<2x32xf32>
    %267 = arith.divf %265, %266 : vector<2x32xf32>
    %268 = vector.extract_strided_slice %255 {offsets = [0, 32], sizes = [2, 32], strides = [1, 1]} : vector<2x96xf32> to vector<2x32xf32>
    %269 = vector.extract_strided_slice %259 {offsets = [0, 32], sizes = [2, 32], strides = [1, 1]} : vector<2x96xf32> to vector<2x32xf32>
    %270 = arith.addf %268, %269 : vector<2x32xf32>
    %271 = arith.negf %270 : vector<2x32xf32>
    %272 = math.exp %271 : vector<2x32xf32>
    %cst_132 = arith.constant 1.000000e+00 : f32
    %273 = vector.broadcast %cst_132 : f32 to vector<2x32xf32>
    %274 = arith.addf %273, %272 : vector<2x32xf32>
    %275 = arith.divf %273, %274 : vector<2x32xf32>
    %276 = vector.extract_strided_slice %255 {offsets = [0, 64], sizes = [2, 32], strides = [1, 1]} : vector<2x96xf32> to vector<2x32xf32>
    %277 = vector.extract_strided_slice %259 {offsets = [0, 64], sizes = [2, 32], strides = [1, 1]} : vector<2x96xf32> to vector<2x32xf32>
    %278 = arith.mulf %267, %277 : vector<2x32xf32>
    %279 = arith.addf %276, %278 : vector<2x32xf32>
    %280 = math.tanh %279 : vector<2x32xf32>
    %cst_133 = arith.constant 1.000000e+00 : f32
    %281 = vector.broadcast %cst_133 : f32 to vector<2x32xf32>
    %282 = arith.subf %281, %275 : vector<2x32xf32>
    %283 = arith.mulf %282, %280 : vector<2x32xf32>
    %284 = arith.mulf %275, %210 : vector<2x32xf32>
    %285 = arith.addf %283, %284 : vector<2x32xf32>
    %cst_134 = arith.constant 0.000000e+00 : f32
    %286 = vector.broadcast %cst_134 : f32 to vector<2x32xf32>
    %287 = arith.maximumf %285, %286 : vector<2x32xf32>
    %288 = arith.truncf %287 : vector<2x32xf32> to vector<2x32xbf16>
    %cst_135 = arith.constant dense<0.000000e+00> : vector<2x32xf32>
    %289 = tpu.matmul %288, %33, %cst_135 {dimension_numbers = #tpu.dot_dimension_numbers<[1], [0], [0], [1], [0, 0, 1, 1], [], []>} : vector<2x32xbf16>, vector<32x32xbf16>, vector<2x32xf32> -> vector<2x32xf32>
    %290 = arith.truncf %289 : vector<2x32xf32> to vector<2x32xbf16>
    %cst_136 = arith.constant dense<0.000000e+00> : vector<2x1xf32>
    %291 = tpu.matmul %290, %26, %cst_136 {dimension_numbers = #tpu.dot_dimension_numbers<[1], [0], [0], [1], [0, 0, 1, 1], [], []>} : vector<2x32xbf16>, vector<32x1xbf16>, vector<2x1xf32> -> vector<2x1xf32>
    %292 = arith.truncf %291 : vector<2x1xf32> to vector<2x1xbf16>
    %cst_137 = arith.constant dense<0.000000e+00> : vector<16x1xf32>
    %293 = tpu.matmul %4, %292, %cst_137 {dimension_numbers = #tpu.dot_dimension_numbers<[1], [0], [0], [1], [0, 0, 1, 1], [], []>} : vector<16x2xbf16>, vector<2x1xbf16>, vector<16x1xf32> -> vector<16x1xf32>
    %294 = arith.addf %214, %293 : vector<16x1xf32>
    %cst_138 = arith.constant 0.000000e+00 : f32
    %295 = vector.broadcast %cst_138 : f32 to vector<16x1xf32>
    %296 = arith.cmpf ogt, %294, %295 : vector<16x1xf32>
    %cst_139 = arith.constant 0.00999999977 : f32
    %297 = vector.broadcast %cst_139 : f32 to vector<16x1xf32>
    %298 = arith.mulf %297, %294 : vector<16x1xf32>
    %299 = arith.select %296, %294, %298 : vector<16x1xi1>, vector<16x1xf32>
    %cst_140 = arith.constant dense<0xFF800000> : vector<1xf32>
    %300 = vector.multi_reduction <maximumf>, %299, %cst_140 [0] : vector<16x1xf32> to vector<1xf32>
    %301 = vector.shape_cast %300 : vector<1xf32> to vector<1x1xf32>
    %302 = vector.broadcast %301 : vector<1x1xf32> to vector<16x1xf32>
    %303 = arith.subf %299, %302 : vector<16x1xf32>
    %304 = math.exp %303 : vector<16x1xf32>
    %305 = arith.truncf %304 : vector<16x1xf32> to vector<16x1xbf16>
    %cst_141 = arith.constant dense<0.000000e+00> : vector<2x1xf32>
    %306 = tpu.matmul %4, %305, %cst_141 {dimension_numbers = #tpu.dot_dimension_numbers<[0], [0], [1], [1], [0, 1, 1, 1], [], []>} : vector<16x2xbf16>, vector<16x1xbf16>, vector<2x1xf32> -> vector<2x1xf32>
    %307 = arith.truncf %306 : vector<2x1xf32> to vector<2x1xbf16>
    %cst_142 = arith.constant dense<0.000000e+00> : vector<16x1xf32>
    %308 = tpu.matmul %4, %307, %cst_142 {dimension_numbers = #tpu.dot_dimension_numbers<[1], [0], [0], [1], [0, 0, 1, 1], [], []>} : vector<16x2xbf16>, vector<2x1xbf16>, vector<16x1xf32> -> vector<16x1xf32>
    %309 = tpu.reciprocal %308 {approx = true} : vector<16x1xf32> -> vector<16x1xf32>
    %310 = arith.mulf %304, %309 : vector<16x1xf32>
    %311 = vector.broadcast %310 : vector<16x1xf32> to vector<16x32xf32>
    %312 = arith.mulf %311, %212 : vector<16x32xf32>
    %313 = arith.truncf %312 : vector<16x32xf32> to vector<16x32xbf16>
    %cst_143 = arith.constant dense<0.000000e+00> : vector<2x32xf32>
    %314 = tpu.matmul %4, %313, %cst_143 {dimension_numbers = #tpu.dot_dimension_numbers<[0], [0], [1], [1], [0, 1, 1, 1], [], []>} : vector<16x2xbf16>, vector<16x32xbf16>, vector<2x32xf32> -> vector<2x32xf32>
    %315 = vector.broadcast %28 : vector<1x32xf32> to vector<2x32xf32>
    %316 = arith.addf %314, %315 : vector<2x32xf32>
    %cst_144 = arith.constant 0.000000e+00 : f32
    %317 = vector.broadcast %cst_144 : f32 to vector<2x32xf32>
    %318 = arith.cmpf ogt, %316, %317 : vector<2x32xf32>
    %cst_145 = arith.constant 0.000000e+00 : f32
    %319 = vector.broadcast %cst_145 : f32 to vector<2x32xf32>
    %320 = arith.minimumf %316, %319 : vector<2x32xf32>
    %321 = math.exp %320 : vector<2x32xf32>
    %cst_146 = arith.constant 1.000000e+00 : f32
    %322 = vector.broadcast %cst_146 : f32 to vector<2x32xf32>
    %323 = arith.subf %321, %322 : vector<2x32xf32>
    %324 = arith.select %318, %316, %323 : vector<2x32xi1>, vector<2x32xf32>
    %325 = arith.truncf %324 : vector<2x32xf32> to vector<2x32xbf16>
    %cst_147 = arith.constant dense<0.000000e+00> : vector<2x96xf32>
    %326 = tpu.matmul %325, %32, %cst_147 {dimension_numbers = #tpu.dot_dimension_numbers<[1], [0], [0], [1], [0, 0, 1, 1], [], []>} : vector<2x32xbf16>, vector<32x96xbf16>, vector<2x96xf32> -> vector<2x96xf32>
    %327 = vector.broadcast %30 : vector<1x96xf32> to vector<2x96xf32>
    %328 = arith.addf %326, %327 : vector<2x96xf32>
    %329 = arith.truncf %287 : vector<2x32xf32> to vector<2x32xbf16>
    %cst_148 = arith.constant dense<0.000000e+00> : vector<2x96xf32>
    %330 = tpu.matmul %329, %31, %cst_148 {dimension_numbers = #tpu.dot_dimension_numbers<[1], [0], [0], [1], [0, 0, 1, 1], [], []>} : vector<2x32xbf16>, vector<32x96xbf16>, vector<2x96xf32> -> vector<2x96xf32>
    %331 = vector.broadcast %29 : vector<1x96xf32> to vector<2x96xf32>
    %332 = arith.addf %330, %331 : vector<2x96xf32>
    %333 = vector.extract_strided_slice %328 {offsets = [0, 0], sizes = [2, 32], strides = [1, 1]} : vector<2x96xf32> to vector<2x32xf32>
    %334 = vector.extract_strided_slice %332 {offsets = [0, 0], sizes = [2, 32], strides = [1, 1]} : vector<2x96xf32> to vector<2x32xf32>
    %335 = arith.addf %333, %334 : vector<2x32xf32>
    %336 = arith.negf %335 : vector<2x32xf32>
    %337 = math.exp %336 : vector<2x32xf32>
    %cst_149 = arith.constant 1.000000e+00 : f32
    %338 = vector.broadcast %cst_149 : f32 to vector<2x32xf32>
    %339 = arith.addf %338, %337 : vector<2x32xf32>
    %340 = arith.divf %338, %339 : vector<2x32xf32>
    %341 = vector.extract_strided_slice %328 {offsets = [0, 32], sizes = [2, 32], strides = [1, 1]} : vector<2x96xf32> to vector<2x32xf32>
    %342 = vector.extract_strided_slice %332 {offsets = [0, 32], sizes = [2, 32], strides = [1, 1]} : vector<2x96xf32> to vector<2x32xf32>
    %343 = arith.addf %341, %342 : vector<2x32xf32>
    %344 = arith.negf %343 : vector<2x32xf32>
    %345 = math.exp %344 : vector<2x32xf32>
    %cst_150 = arith.constant 1.000000e+00 : f32
    %346 = vector.broadcast %cst_150 : f32 to vector<2x32xf32>
    %347 = arith.addf %346, %345 : vector<2x32xf32>
    %348 = arith.divf %346, %347 : vector<2x32xf32>
    %349 = vector.extract_strided_slice %328 {offsets = [0, 64], sizes = [2, 32], strides = [1, 1]} : vector<2x96xf32> to vector<2x32xf32>
    %350 = vector.extract_strided_slice %332 {offsets = [0, 64], sizes = [2, 32], strides = [1, 1]} : vector<2x96xf32> to vector<2x32xf32>
    %351 = arith.mulf %340, %350 : vector<2x32xf32>
    %352 = arith.addf %349, %351 : vector<2x32xf32>
    %353 = math.tanh %352 : vector<2x32xf32>
    %cst_151 = arith.constant 1.000000e+00 : f32
    %354 = vector.broadcast %cst_151 : f32 to vector<2x32xf32>
    %355 = arith.subf %354, %348 : vector<2x32xf32>
    %356 = arith.mulf %355, %353 : vector<2x32xf32>
    %357 = arith.mulf %348, %287 : vector<2x32xf32>
    %358 = arith.addf %356, %357 : vector<2x32xf32>
    %cst_152 = arith.constant 0.000000e+00 : f32
    %359 = vector.broadcast %cst_152 : f32 to vector<2x32xf32>
    %360 = arith.maximumf %358, %359 : vector<2x32xf32>
    %361 = arith.truncf %360 : vector<2x32xf32> to vector<2x32xbf16>
    %cst_153 = arith.constant dense<0.000000e+00> : vector<2x128xf32>
    %362 = tpu.matmul %361, %25, %cst_153 {dimension_numbers = #tpu.dot_dimension_numbers<[1], [0], [0], [1], [0, 0, 1, 1], [], []>} : vector<2x32xbf16>, vector<32x128xbf16>, vector<2x128xf32> -> vector<2x128xf32>
    %363 = vector.broadcast %24 : vector<1x128xf32> to vector<2x128xf32>
    %364 = arith.addf %362, %363 : vector<2x128xf32>
    %c0_154 = arith.constant 0 : index
    %c0_155 = arith.constant 0 : index
    %365 = vector.load %arg34[%c0_154, %c0_155] : memref<2x128xf32, #tpu.memory_space<vmem>>, vector<2x128xf32>
    tpu.vector_store %arg34[%c0_154, %c0_155], %364 {strides = array<i32>} : memref<2x128xf32, #tpu.memory_space<vmem>>, vector<2x128xf32>,
    return
  }
}

</mosaic_0001>

<bundles_post_ra>
// kernel: tpu_custom_call.1
= control target key start
LH: loop header
LB: loop body
LE: loop exit
PB: predicated region body
PF: predicated region fallthrough
CT: control target
= control target key end

     0   :  { %s2747_s6 = smov 1   ;;  %s2748_s10 = smov 2   ;;  %s3300_s0 = inlined_call_operand.smem [shape: u32[35], index: -1, kind: input, shape index: {}] }
   0x1   :  { %s2805_s5 = sld [smem:[%s3300_s0]]   ;;  %s2749_s14 = smov 3  }
   0x2   :  { %s2810_s9 = sld [smem:[%s3300_s0 + %s2747_s6]]   ;;  %s2750_s18 = smov 4  }
   0x3   :  { %s2815_s13 = sld [smem:[%s3300_s0 + %s2748_s10]]   ;;  %s2751_s22 = smov 5  }
   0x4   :  { %s2820_s17 = sld [smem:[%s3300_s0 + %s2749_s14]]   ;;  %s2752_s26 = smov 6  }
   0x5   :  { %s2825_s21 = sld [smem:[%s3300_s0 + %s2750_s18]]   ;;  %s2753_s30 = smov 7  }
   0x6   :  { %s2830_s25 = sld [smem:[%s3300_s0 + %s2751_s22]]   ;;  %s2754_s4 = smov 8  }
   0x7   :  { %s2835_s29 = sld [smem:[%s3300_s0 + %s2752_s26]]   ;;  %s2755_s10 = smov 9  }
   0x8   :  { %s2840_s3 = sld [smem:[%s3300_s0 + %s2753_s30]]   ;;  %s2756_s15 = smov 10  }
   0x9   :  { %s2845_s8 = sld [smem:[%s3300_s0 + %s2754_s4]]   ;;  %s2757_s20 = smov 11  }
   0xa   :  { %3312 = sst [smem:[#allocation24_spill]] %s2820_s17  ;;  %s2758_s26 = smov 12  }
   0xb   :  { %3313 = sst [smem:[#allocation25_spill]] %s2825_s21  ;;  %s2759_s1 = smov 13  }
   0xc   :  { %3314 = sst [smem:[#allocation26_spill]] %s2830_s25  ;;  %s2760_s7 = smov 14  }
   0xd   :  { %3315 = sst [smem:[#allocation27_spill]] %s2835_s29  ;;  %s2762_s22 = smov 16  }
   0xe   :  { %s2850_s14 = sld [smem:[%s3300_s0 + %s2755_s10]]   ;;  %s2763_s28 = smov 17  }
   0xf   :  { %s2855_s19 = sld [smem:[%s3300_s0 + %s2756_s15]]   ;;  %s2761_s15 = smov 15  }
  0x10   :  { %s2860_s24 = sld [smem:[%s3300_s0 + %s2757_s20]]  }
  0x11   :  { %s2865_s30 = sld [smem:[%s3300_s0 + %s2758_s26]]  }
  0x12   :  { %s2870_s6 = sld [smem:[%s3300_s0 + %s2759_s1]]  }
  0x13   :  { %s2875_s12 = sld [smem:[%s3300_s0 + %s2760_s7]]   ;;  %s2764_s7 = smov 18  }
  0x14   :  { %3316 = sst [smem:[#allocation28_spill]] %s2850_s14 }
  0x15   :  { %3317 = sst [smem:[#allocation29_spill]] %s2855_s19 }
  0x16   :  { %3318 = sst [smem:[#allocation30_spill]] %s2860_s24 }
  0x17   :  { %3319 = sst [smem:[#allocation31_spill]] %s2865_s30 }
  0x18   :  { %s2880_s20 = sld [smem:[%s3300_s0 + %s2761_s15]]   ;;  %s2765_s15 = smov 19  }
  0x19   :  { %s2885_s27 = sld [smem:[%s3300_s0 + %s2762_s22]]   ;;  %s2766_s22 = smov 20  }
  0x1a   :  { %s2890_s4 = sld [smem:[%s3300_s0 + %s2763_s28]]   ;;  %s2767_s28 = smov 21  }
  0x1b   :  { %s2895_s21 = sld [smem:[%s3300_s0 + %s2764_s7]]   ;;  %s2768_s7 = smov 22  }
  0x1c   :  { %s2900_s29 = sld [smem:[%s3300_s0 + %s2765_s15]]   ;;  %s2769_s15 = smov 23  }
  0x1d   :  { %s2905_s19 = sld [smem:[%s3300_s0 + %s2766_s22]]   ;;  %s2770_s22 = smov 24  }
  0x1e   :  { %s2910_s14 = sld [smem:[%s3300_s0 + %s2767_s28]]   ;;  %s2771_s28 = smov 25  }
  0x1f   :  { %s2915_s25 = sld [smem:[%s3300_s0 + %s2768_s7]]   ;;  %s2772_s7 = smov 26  }
  0x20   :  { %s2920_s24 = sld [smem:[%s3300_s0 + %s2769_s15]]   ;;  %s2773_s15 = smov 27  }
  0x21   :  { %s2935_s17 = sld [smem:[%s3300_s0 + %s2772_s7]]   ;;  %s2776_s7 = smov 30  }
  0x22   :  { %s2940_s30 = sld [smem:[%s3300_s0 + %s2773_s15]]   ;;  %s2777_s15 = smov 31  }
  0x23   :  { %3320 = sst [smem:[#allocation32_spill]] %s2905_s19 }
  0x24   :  { %3321 = sst [smem:[#allocation33_spill]] %s2910_s14 }
  0x25   :  { %s2925_s19 = sld [smem:[%s3300_s0 + %s2770_s22]]   ;;  %s2774_s22 = smov 28  }
  0x26   :  { %s2930_s14 = sld [smem:[%s3300_s0 + %s2771_s28]]   ;;  %s2775_s28 = smov 29  }
  0x27   :  { %3324 = sst [smem:[#allocation36_spill]] %s2935_s17 }
  0x28   :  { %3325 = sst [smem:[#allocation37_spill]] %s2940_s30 }
  0x29   :  { %s2955_s17 = sld [smem:[%s3300_s0 + %s2776_s7]]   ;;  %s2780_s7 = smov 34  }
  0x2a   :  { %s2960_s30 = sld [smem:[%s3300_s0 + %s2777_s15]]  }
  0x2b   :  { %3322 = sst [smem:[#allocation34_spill]] %s2925_s19 }
  0x2c   :  { %3323 = sst [smem:[#allocation35_spill]] %s2930_s14 }
  0x2d   :  { %s2945_s19 = sld [smem:[%s3300_s0 + %s2774_s22]]   ;;  %s2778_s22 = smov 32  }
  0x2e   :  { %s2950_s14 = sld [smem:[%s3300_s0 + %s2775_s28]]   ;;  %s2779_s28 = smov 33  }
  0x2f   :  { %3328 = sst [smem:[#allocation40_spill]] %s2955_s17 }
  0x30   :  { %s2975_s17 = sld [smem:[%s3300_s0 + %s2780_s7]]  }
  0x33   :  { %3326 = sst [smem:[#allocation38_spill]] %s2945_s19 }
  0x34   :  { %3327 = sst [smem:[#allocation39_spill]] %s2950_s14 }
  0x35   :  { %s2965_s19 = sld [smem:[%s3300_s0 + %s2778_s22]]  }
  0x36   :  { %s2970_s14 = sld [smem:[%s3300_s0 + %s2779_s28]]  }
  0x37   :  { %74 = vsyncpa [#allocation3], 0 }
  0x38   :  { %75 = vsyncpa [#allocation6], 0 }
  0x39   :  { %76 = vsyncpa [#allocation9], 0 }
  0x3a   :  { %77 = vsyncpa [#allocation12], 0 }
  0x3b   :  { %78 = vsyncpa [#allocation15], 0  ;;  %s110_s15 = sshll.u32 %s2845_s8, 4  ;;  %s111_s15 = int_to_ptr.hbm [resolvable:$true] %s110_s15 }
  0x3c   :  { %79 = vsyncpa [#allocation4], 0  ;;  %s2781_s16 = smov [#allocation5]   ;;  %s141_s22 = sshll.u32 %s2880_s20, 4  ;;  %s142_s22 = int_to_ptr.hbm [resolvable:$true] %s141_s22 }
  0x3d   :  { %s112_s18 = sshll.u32 %s2781_s16, 4  ;;  %s2495_s23 = sshra.s32 %s111_s15, 4  ;;  %s113_s18 = int_to_ptr.vmem [resolvable:$true] %s112_s18  ;;  %s2496_s23 = int_to_ptr.hbm [resolvable:$true] %s2495_s23 }
  0x3e   :  { %s2497_s0 = scalar_lea.hbm %s2496_s23, 1  ;;  %s2499_s26 = scalar_lea.hbm %s2845_s8, 1 }
  0x3f   :  { %p2498_p0 = scmp.ne.s32.totalorder %s2496_s23, %s2497_s0  ;;  %p2500_p1 = scmp.lt.s32.totalorder %s2496_s23, %s2845_s8 }
  0x40   :  { %p2501_p2 = scmp.lt.s32.totalorder %s2499_s26, %s2497_s0 }
  0x42   :  { %p2502_p3 = por %p2501_p2, %p2500_p1 }
  0x44   :  { %p2503_p4 = pnand %p2502_p3, %p2498_p0 }
  0x46   :  { %2506 = shalt.err (!%p2503_p4)
}
  0x47   :  { %115 = dma.hbm_to_vmem [thread:$0]  %s111_s15, 16, %s113_s18, [#allocation6]  }
  0x48   :  { %s2782_s28 = smov [#allocation8]   ;;  %s2519_s2 = sshra.s32 %s142_s22, 4  ;;  %s2520_s2 = int_to_ptr.hbm [resolvable:$true] %s2519_s2 }
  0x49   :  { %s143_s1 = sshll.u32 %s2782_s28, 4  ;;  %s2521_s7 = scalar_lea.hbm %s2520_s2, 8  ;;  %s144_s1 = int_to_ptr.vmem [resolvable:$true] %s143_s1 }
  0x4a   :  { %p2522_p5 = scmp.ne.s32.totalorder %s2520_s2, %s2521_s7  ;;  %s2523_s10 = scalar_lea.hbm %s2880_s20, 8 }
  0x4b   :  { %p2524_p6 = scmp.lt.s32.totalorder %s2520_s2, %s2880_s20  ;;  %p2525_p7 = scmp.lt.s32.totalorder %s2523_s10, %s2521_s7 }
  0x4d   :  { %p2526_p8 = por %p2525_p7, %p2524_p6 }
  0x4f   :  { %p2527_p9 = pnand %p2526_p8, %p2522_p5 }
  0x51   :  { %2530 = shalt.err (!%p2527_p9)
}
  0x52   :  { %s2783_s8 = smov 64   ;;  %s2784_s11 = smov 4  }
  0x53   :  { %149 = dma.hbm_to_vmem [thread:$0]  %s142_s22, 128, %s144_s1, [#allocation9], %s2783_s8, %s2783_s8, %s2784_s11  }
  0x54   :  { %s170_s15 = sshll.u32 %s2900_s29, 4  ;;  %s2785_s16 = smov [#allocation11]   ;;  %s171_s15 = int_to_ptr.hbm [resolvable:$true] %s170_s15 }
  0x55   :  { %s172_s18 = sshll.u32 %s2785_s16, 4  ;;  %s215_s20 = sshll.u32 %s2965_s19, 4  ;;  %s173_s18 = int_to_ptr.vmem [resolvable:$true] %s172_s18  ;;  %s216_s20 = int_to_ptr.hbm [resolvable:$true] %s215_s20 }
  0x56   :  { %s2543_s23 = sshra.s32 %s171_s15, 4  ;;  %s2547_s26 = scalar_lea.hbm %s2900_s29, 1  ;;  %s2544_s23 = int_to_ptr.hbm [resolvable:$true] %s2543_s23 }
  0x57   :  { %s2545_s0 = scalar_lea.hbm %s2544_s23, 1  ;;  %p2548_p11 = scmp.lt.s32.totalorder %s2544_s23, %s2900_s29 }
  0x58   :  { %p2546_p10 = scmp.ne.s32.totalorder %s2544_s23, %s2545_s0  ;;  %p2549_p12 = scmp.lt.s32.totalorder %s2547_s26, %s2545_s0 }
  0x5a   :  { %p2550_p13 = por %p2549_p12, %p2548_p11 }
  0x5c   :  { %p2551_p0 = pnand %p2550_p13, %p2546_p10 }
  0x5e   :  { %2554 = shalt.err (!%p2551_p0)
}
  0x5f   :  { %175 = dma.hbm_to_vmem [thread:$0]  %s171_s15, 16, %s173_s18, [#allocation12]  }
  0x60   :  { %s2786_s22 = smov [#allocation14]   ;;  %s99_s1 = sshll.u32 %s2840_s3, 4  ;;  %s100_s1 = int_to_ptr.hbm [resolvable:$true] %s99_s1 }
  0x61   :  { %s217_s28 = sshll.u32 %s2786_s22, 4  ;;  %s2567_s2 = sshra.s32 %s216_s20, 4  ;;  %s218_s28 = int_to_ptr.vmem [resolvable:$true] %s217_s28  ;;  %s2568_s2 = int_to_ptr.hbm [resolvable:$true] %s2567_s2 }
  0x62   :  { %s2569_s7 = scalar_lea.hbm %s2568_s2, 16  ;;  %s2571_s10 = scalar_lea.hbm %s2965_s19, 16 }
  0x63   :  { %p2570_p1 = scmp.ne.s32.totalorder %s2568_s2, %s2569_s7  ;;  %p2572_p2 = scmp.lt.s32.totalorder %s2568_s2, %s2965_s19 }
  0x64   :  { %p2573_p3 = scmp.lt.s32.totalorder %s2571_s10, %s2569_s7 }
  0x66   :  { %p2574_p4 = por %p2573_p3, %p2572_p2 }
  0x68   :  { %p2575_p5 = pnand %p2574_p4, %p2570_p1 }
  0x6a   :  { %2578 = shalt.err (!%p2575_p5)
}
  0x6b   :  { %223 = dma.hbm_to_vmem [thread:$0]  %s216_s20, 256, %s218_s28, [#allocation15], %s2783_s8, %s2783_s8, %s2784_s11  }
  0x6c   :  { %s131_s29 = sshll.u32 %s2875_s12, 4  ;;  %s2787_s15 = smov [#allocation2]   ;;  %s132_s29 = int_to_ptr.hbm [resolvable:$true] %s131_s29 }
  0x6d   :  { %s101_s16 = sshll.u32 %s2787_s15, 4  ;;  %s2591_s18 = sshra.s32 %s100_s1, 4  ;;  %s102_s16 = int_to_ptr.vmem [resolvable:$true] %s101_s16  ;;  %s2592_s18 = int_to_ptr.hbm [resolvable:$true] %s2591_s18 }
  0x6e   :  { %s2593_s23 = scalar_lea.hbm %s2592_s18, 1  ;;  %s2595_s19 = scalar_lea.hbm %s2840_s3, 1 }
  0x6f   :  { %p2594_p6 = scmp.ne.s32.totalorder %s2592_s18, %s2593_s23  ;;  %p2596_p7 = scmp.lt.s32.totalorder %s2592_s18, %s2840_s3 }
  0x70   :  { %p2597_p8 = scmp.lt.s32.totalorder %s2595_s19, %s2593_s23 }
  0x72   :  { %p2598_p9 = por %p2597_p8, %p2596_p7 }
  0x74   :  { %p2599_p10 = pnand %p2598_p9, %p2594_p6 }
  0x76   :  { %2602 = shalt.err (!%p2599_p10)
}
  0x77   :  { %104 = dma.hbm_to_vmem [thread:$0]  %s100_s1, 16, %s102_s16, [#allocation3]  }
  0x78   :  { %s2788_s20 = smov [#allocation7]   ;;  %s159_s26 = sshll.u32 %s2895_s21, 4  ;;  %s160_s26 = int_to_ptr.hbm [resolvable:$true] %s159_s26 }
  0x79   :  { %s133_s0 = sshll.u32 %s2788_s20, 4  ;;  %s2615_s22 = sshra.s32 %s132_s29, 4  ;;  %s134_s0 = int_to_ptr.vmem [resolvable:$true] %s133_s0  ;;  %s2616_s22 = int_to_ptr.hbm [resolvable:$true] %s2615_s22 }
  0x7a   :  { %s2617_s28 = scalar_lea.hbm %s2616_s22, 1  ;;  %s2619_s2 = scalar_lea.hbm %s2875_s12, 1 }
  0x7b   :  { %p2618_p11 = scmp.ne.s32.totalorder %s2616_s22, %s2617_s28  ;;  %p2620_p12 = scmp.lt.s32.totalorder %s2616_s22, %s2875_s12 }
  0x7c   :  { %p2621_p13 = scmp.lt.s32.totalorder %s2619_s2, %s2617_s28 }
  0x7e   :  { %p2622_p0 = por %p2621_p13, %p2620_p12 }
  0x80   :  { %p2623_p1 = pnand %p2622_p0, %p2618_p11 }
  0x82   :  { %2626 = shalt.err (!%p2623_p1)
}
  0x83   :  { %136 = dma.hbm_to_vmem [thread:$0]  %s132_s29, 16, %s134_s0, [#allocation6]  }
  0x84   :  { %s186_s3 = sshll.u32 %s2920_s24, 4  ;;  %s2789_s1 = smov [#allocation10]   ;;  %s3003_s3 = int_to_ptr.hbm [resolvable:$true] %s186_s3 }
  0x85   :  { %s161_s7 = sshll.u32 %s2789_s1, 4  ;;  %s2639_s10 = sshra.s32 %s160_s26, 4  ;;  %s162_s7 = int_to_ptr.vmem [resolvable:$true] %s161_s7  ;;  %s2640_s10 = int_to_ptr.hbm [resolvable:$true] %s2639_s10 }
  0x86   :  { %s2641_s15 = scalar_lea.hbm %s2640_s10, 1  ;;  %s2643_s16 = scalar_lea.hbm %s2895_s21, 1 }
  0x87   :  { %p2642_p2 = scmp.ne.s32.totalorder %s2640_s10, %s2641_s15  ;;  %p2644_p3 = scmp.lt.s32.totalorder %s2640_s10, %s2895_s21 }
  0x88   :  { %p2645_p4 = scmp.lt.s32.totalorder %s2643_s16, %s2641_s15 }
  0x8a   :  { %p2646_p5 = por %p2645_p4, %p2644_p3 }
  0x8c   :  { %p2647_p6 = pnand %p2646_p5, %p2642_p2 }
  0x8e   :  { %2650 = shalt.err (!%p2647_p6)
}
  0x8f   :  { %164 = dma.hbm_to_vmem [thread:$0]  %s160_s26, 16, %s162_s7, [#allocation9]  }
  0x90   :  { %s2790_s12 = smov [#allocation13]   ;;  %s228_s18 = sshll.u32 %s2970_s14, 4  ;;  %s229_s18 = int_to_ptr.hbm [resolvable:$true] %s228_s18 }
  0x91   :  { %s188_s29 = sshll.u32 %s2790_s12, 4  ;;  %s2663_s23 = sshra.s32 %s3003_s3, 4  ;;  %s189_s29 = int_to_ptr.vmem [resolvable:$true] %s188_s29  ;;  %s2664_s23 = int_to_ptr.hbm [resolvable:$true] %s2663_s23 }
  0x92   :  { %s2665_s19 = scalar_lea.hbm %s2664_s23, 8  ;;  %s2667_s20 = scalar_lea.hbm %s2920_s24, 8 }
  0x93   :  { %p2666_p7 = scmp.ne.s32.totalorder %s2664_s23, %s2665_s19  ;;  %p2668_p8 = scmp.lt.s32.totalorder %s2664_s23, %s2920_s24 }
  0x94   :  { %p2669_p9 = scmp.lt.s32.totalorder %s2667_s20, %s2665_s19 }
  0x96   :  { %p2670_p10 = por %p2669_p9, %p2668_p8 }
  0x98   :  { %p2671_p11 = pnand %p2670_p10, %p2666_p7 }
  0x9a   :  { %2674 = shalt.err (!%p2671_p11)
}
  0x9b   :  { %194 = dma.hbm_to_vmem [thread:$0]  %s3003_s3, 128, %s189_s29, [#allocation12], %s2783_s8, %s2783_s8, %s2784_s11  }
  0x9c   :  { %s2791_s21 = smov [#allocation16]   ;;  %s2687_s26 = sshra.s32 %s229_s18, 4  ;;  %s2688_s26 = int_to_ptr.hbm [resolvable:$true] %s2687_s26 }
  0x9d   :  { %s230_s0 = sshll.u32 %s2791_s21, 4  ;;  %s2689_s22 = scalar_lea.hbm %s2688_s26, 16  ;;  %s231_s0 = int_to_ptr.vmem [resolvable:$true] %s230_s0 }
  0x9e   :  { %p2690_p12 = scmp.ne.s32.totalorder %s2688_s26, %s2689_s22  ;;  %s2691_s24 = scalar_lea.hbm %s2970_s14, 16 }
  0x9f   :  { %p2692_p13 = scmp.lt.s32.totalorder %s2688_s26, %s2970_s14  ;;  %p2693_p0 = scmp.lt.s32.totalorder %s2691_s24, %s2689_s22 }
  0xa1   :  { %p2694_p1 = por %p2693_p0, %p2692_p13 }
  0xa3   :  { %p2695_p2 = pnand %p2694_p1, %p2690_p12 }
  0xa5   :  { %2698 = shalt.err (!%p2695_p2)
}
  0xa6   :  { %236 = dma.hbm_to_vmem [thread:$0]  %s229_s18, 256, %s231_s0, [#allocation15], %s2783_s8, %s2783_s8, %s2784_s11  }
  0xa7   :  { %2735 = dma.done.wait [#allocation3], 16  }
  0xa8   :  { %2736 = vsyncadd [#allocation3], 4294967280 }
  0xa9   :  { %2737 = dma.done.wait [#allocation6], 32  }
  0xaa   :  { %2738 = vsyncadd [#allocation6], 4294967264 }
  0xab   :  { %2739 = dma.done.wait [#allocation9], 144  }
  0xac   :  { %2740 = vsyncadd [#allocation9], 4294967152 }
  0xad   :  { %2741 = dma.done.wait [#allocation12], 144  }
  0xae   :  { %2742 = vsyncadd [#allocation12], 4294967152 }
  0xaf   :  { %2743 = dma.done.wait [#allocation15], 512  }
  0xb0   :  { %2744 = vsyncadd [#allocation15], 4294966784  ;;  %v2322_v0 = vld [vmem:[#allocation13] sm:$0xff]  ;;  %v2293_v1 = vld [vmem:[%s2805_s5] sm:$0xff]  ;;  %vm383_vm0 = vcmask 130048   ;;  %vm498_vm3 = vcmask 261120  }
  0xb1   :  { %394 = vmatpush.bf16.msra.mxu0 %v2322_v0  ;;  %v2312_v2 = vld [vmem:[%s2870_s6 + $0x8] sm:$0xff]  ;;  %v2311_v3 = vld [vmem:[%s2870_s6] sm:$0xff]  ;;  %s3329_s5 = sld [smem:[#allocation31_spill]]  ;;  %vm683_vm11 = vcmask 7168   ;;  %s2793_s6 = smov 96  }
  0xb2   :  { %v2388_v5 = vld [vmem:[%s2915_s25] ss:$0 sm:$0xff]  ;;  %v3042_v15 = vld [vmem:[%s2815_s13 + $0x8] sm:$0xff]  ;;  %s3332_s25 = sld [smem:[#allocation33_spill]]  ;;  %s2795_s28 = smov 127  }
  0xb3   :  { %v3034_v14 = vld [vmem:[%s2815_s13] sm:$0xff]  ;;  %v2315_v18 = vld [vmem:[%s2885_s27 + $0x8] sm:$0xff]  ;;  %s3330_s13 = sld [smem:[#allocation24_spill]]  ;;  %s2011_s23 = sshll.u32 %s2975_s17, 4  ;;  %s2012_s23 = int_to_ptr.hbm [resolvable:$true] %s2011_s23 }
  0xb4   :  { %2067 = vmatmul.msk.bf16.vlgmr.msra.gmra.mxu0 %vm383_vm0, %v2293_v1  ;;  %v2313_v16 = vld [vmem:[#allocation8] sm:$0xff]  ;;  %511 = vmatpush.bf16.msra.mxu3 %v2315_v18  ;;  %s3333_s14 = sld [smem:[#allocation30_spill]]  ;;  %s2723_s19 = sshra.s32 %s2012_s23, 4  ;;  %s2724_s19 = int_to_ptr.hbm [resolvable:$true] %s2723_s19 }
  0xb5   :  { %559 = vmatpush.bf16.msrb.mxu0 %v2312_v2  ;;  %474 = vmatpush.bf16.msra.mxu2 %v2313_v16  ;;  %v2294_v17 = vld [vmem:[%s2810_s9] sm:$0xff]  ;;  %v2295_v20 = vld [vmem:[%s2810_s9 + $0x8] sm:$0xff]  ;;  %s3331_s9 = sld [smem:[#allocation32_spill]]  ;;  %s2725_s20 = scalar_lea.hbm %s2724_s19, 2 }
  0xb6   :  { %v2314_v19 = vld [vmem:[%s2885_s27] sm:$0xff]  ;;  %v2317_v30 = vld [vmem:[%s2890_s4 + $0x8] sm:$0xff]  ;;  %s2794_s27 = smov 32   ;;  %s3335_s11 = sld [smem:[#allocation28_spill]] }
  0xb7   :  { %v2310_v31 = vld [vmem:[%s3329_s5 + $0x8] sm:$0xff]  ;;  %v2316_v32 = vld [vmem:[%s2890_s4] sm:$0xff]  ;;  %s3334_s4 = sld [smem:[#allocation26_spill]]  ;;  %p2726_p3 = scmp.ne.s32.totalorder %s2724_s19, %s2725_s20 }
  0xb8   :  { %2090 = vmatmul.msk.bf16.vlgmr.msra.gmra.mxu2 %vm383_vm0, %v2294_v17  ;;  %512 = vmatpush.bf16.msra.mxu3 %v2314_v19  ;;  %v2309_v33 = vld [vmem:[%s3329_s5] sm:$0xff]  ;;  %s3336_s2 = sld [smem:[#allocation29_spill]]  ;;  %s2727_s21 = scalar_lea.hbm %s2975_s17, 2 }
  0xb9   :  { %560 = vmatpush.bf16.msrb.mxu0 %v2311_v3  ;;  %658 = vmatpush.bf16.msrb.mxu2 %v2310_v31  ;;  %v3059_v34 = vld [vmem:[%s3330_s13] sm:$0xff]  ;;  %v3065_v36 = vld [vmem:[%s3330_s13 + $0x8] sm:$0xff]  ;;  %s3337_s3 = sld [smem:[#allocation27_spill]]  ;;  %p2728_p4 = scmp.lt.s32.totalorder %s2724_s19, %s2975_s17 }
  0xba   :  { %713 = vxpose.xlu0.c.b16.start [1/2] (short) (narrow) %v3059_v34, 16  ;;  %s3338_s1 = sld [smem:[#allocation25_spill]]  ;;  %p2729_p5 = scmp.lt.s32.totalorder %s2727_s21, %s2725_s20 }
  0xbb   :  { %v2319_v38 = vld [vmem:[%s3331_s9 + $0x8] sm:$0xff]  ;;  %v2318_v39 = vld [vmem:[%s3331_s9] sm:$0xff]  ;;  %s3339_s7 = sld [smem:[#allocation37_spill]] }
  0xbc   :  { %s3340_s10 = sld [smem:[#allocation36_spill]]  ;;  %p2730_p6 = por %p2729_p5, %p2728_p4 }
  0xbd   :  { %659 = vmatpush.bf16.msrb.mxu2 %v2309_v33  ;;  %s3341_s15 = sld [smem:[#allocation39_spill]] }
  0xbe   :  { %s3343_s16 = sld [smem:[#allocation40_spill]]  ;;  %p2731_p7 = pnand %p2730_p6, %p2726_p3 }
  0xbf   :  { %s3344_s12 = sld [smem:[#allocation35_spill]] }
  0xc0   :  { %s3345_s29 = sld [smem:[#allocation34_spill]] }
  0xc1   :  { %883 = vmatpush.bf16.msra.mxu2 %v2319_v38 }
  0xc5   :  { %884 = vmatpush.bf16.msra.mxu2 %v2318_v39 }
  0xc8   :  { %2091 = vmatmul.msk.bf16.gmra.mxu2 %vm383_vm0, %v2295_v20 }
  0xca   :  { %714 = vxpose.xlu0.c.b16.end [2/2] (short) (narrow) %v3065_v36, 16 }
 0x131   :  { %v396_v4 = vpop.f32.mrf.mxu0 }
 0x132   :  { %v397_v6 = vadd.f32 %v2388_v5, %v396_v4 }
 0x134   :  { %v403_v8 = vmul.f32 0.01, %v397_v6  ;;  %vm401_vm1 = vcmp.gt.f32.partialorder %v397_v6, 0.0 }
 0x136   :  { %v3025_v11 = vsel %vm401_vm1, %v397_v6, %v403_v8 }
 0x139   :  { %v398_v7 = vpop.f32.mrf.mxu0 }
 0x13a   :  { %v399_v9 = vadd.f32 %v2388_v5, %v398_v7 }
 0x13b   :  { %v476_v35 = vpop.f32.mrf.mxu2 }
 0x13c   :  { %vm402_vm2 = vcmp.gt.f32.partialorder %v399_v9, 0.0  ;;  %v404_v10 = vmul.f32 0.01, %v399_v9 }
 0x13e   :  { %v3027_v12 = vsel %vm402_vm2, %v399_v9, %v404_v10 }
 0x13f   :  { %v3031_v13 = vpack.c.bf16 %v3027_v12, %v3025_v11 }
 0x141   :  { %431 = vmatpush.bf16.msra.mxu1 %v3031_v13  ;;  %2110 = vmatmul.msk.bf16.vlgmr.msrb.gmra.mxu0 %vm498_vm3, %v3031_v13 }
 0x143   :  { %v478_v40 = vpop.f32.mrf.mxu2 }
 0x144   :  { %2076 = vmatmul.msk.bf16.vlgmr.msra.gmra.mxu1 %vm383_vm0, %v3034_v14 }
 0x145   :  { %627 = vmatpush.bf16.msrb.mxu1 %v2317_v30 }
 0x149   :  { %628 = vmatpush.bf16.msrb.mxu1 %v2316_v32 }
 0x14b   :  { %v481_v48 = vpop.f32.mrf.mxu2 }
 0x153   :  { %v483_v52 = vpop.f32.mrf.mxu2 }
 0x154   :  { %2077 = vmatmul.msk.bf16.gmra.mxu1 %vm383_vm0, %v3042_v15 }
 0x1be   :  { %v562_v21 = vpop.f32.mrf.mxu0 }
 0x1c1   :  { %v433_v22 = vpop.f32.mrf.mxu1 }
 0x1c6   :  { %v564_v23 = vpop.f32.mrf.mxu0 }
 0x1c7   :  { %v567_v24 = vpack.c.bf16 %v564_v23, %v562_v21 }
 0x1c9   :  { %v435_v25 = vpop.f32.mrf.mxu1  ;;  %591 = vmatpush.bf16.msra.mxu0 %v567_v24 }
 0x1ca   :  { %v443_v26 = vpack.c.bf16 %v435_v25, %v433_v22 }
 0x1cc   :  { %2100 = vmatmul.msk.bf16.vlgmr.msra.gmra.mxu3 %vm498_vm3, %v443_v26  ;;  %2119 = vmatmul.msk.bf16.vlgmr.msra.gmra.mxu0 %vm383_vm0, %v3059_v34 }
 0x1d1   :  { %v438_v27 = vpop.f32.mrf.mxu1 }
 0x1d9   :  { %v440_v28 = vpop.f32.mrf.mxu1 }
 0x1da   :  { %v444_v29 = vpack.c.bf16 %v440_v28, %v438_v27 }
 0x1dc   :  { %2101 = vmatmul.msk.bf16.gmra.mxu3 %vm498_vm3, %v444_v29  ;;  %2120 = vmatmul.msk.bf16.gmra.mxu0 %vm383_vm0, %v3065_v36 }
 0x249   :  { %v593_v60 = vpop.f32.mrf.mxu0 }
 0x24f   :  { %v514_v37 = vpop.f32.mrf.mxu3 }
 0x250   :  { %v515_v41 = vadd.f32 %v514_v37, %v476_v35 }
 0x251   :  { %v595_v62 = vpop.f32.mrf.mxu0 }
 0x252   :  { %v528_v43 = vmul.f32 0.01, %v515_v41  ;;  %vm524_vm4 = vcmp.gt.f32.partialorder %v515_v41, 0.0 }
 0x254   :  { %v532_v46 = vsel %vm524_vm4, %v515_v41, %v528_v43 }
 0x257   :  { %v516_v42 = vpop.f32.mrf.mxu3 }
 0x258   :  { %v517_v44 = vadd.f32 %v516_v42, %v478_v40 }
 0x259   :  { %v598_v0 = vpop.f32.mrf.mxu0 }
 0x25a   :  { %vm525_vm5 = vcmp.gt.f32.partialorder %v517_v44, 0.0  ;;  %v529_v45 = vmul.f32 0.01, %v517_v44 }
 0x25c   :  { %v533_v47 = vsel %vm525_vm5, %v517_v44, %v529_v45 }
 0x25d   :  { %v536_v49 = vpack.c.bf16 %v533_v47, %v532_v46 }
 0x25f   :  { %v519_v50 = vpop.f32.mrf.mxu3  ;;  %2129 = vmatmul.msk.bf16.vlgmr.msrb.gmra.mxu1 %vm498_vm3, %v536_v49  ;;  %2139 = vmatmul.msk.bf16.vlgmr.msrb.gmra.mxu2 %vm498_vm3, %v536_v49  ;;  %v3082_v49 = vpop.trf.xlu0 }
 0x260   :  { %v520_v51 = vadd.f32 %v519_v50, %v481_v48 }
 0x261   :  { %v600_v8 = vpop.f32.mrf.mxu0 }
 0x262   :  { %v530_v54 = vmul.f32 0.01, %v520_v51  ;;  %vm526_vm6 = vcmp.gt.f32.partialorder %v520_v51, 0.0 }
 0x264   :  { %v534_v57 = vsel %vm526_vm6, %v520_v51, %v530_v54 }
 0x267   :  { %v521_v53 = vpop.f32.mrf.mxu3 }
 0x268   :  { %v522_v55 = vadd.f32 %v521_v53, %v483_v52  ;;  %v2792_v53 = vmov 0  }
 0x269   :  { %2386 = vset.pattern.permute.xlu2 %v2792_v53  ;;  %2385 = vset.pattern.permute.xlu1 %v2792_v53 }
 0x26a   :  { %vm527_vm7 = vcmp.gt.f32.partialorder %v522_v55, 0.0  ;;  %v531_v56 = vmul.f32 0.01, %v522_v55  ;;  %2387 = vset.pattern.permute.xlu0 %v2792_v53 }
 0x26c   :  { %v535_v58 = vsel %vm527_vm7, %v522_v55, %v531_v56 }
 0x26d   :  { %v537_v59 = vpack.c.bf16 %v535_v58, %v534_v57 }
 0x26f   :  { %2130 = vmatmul.msk.bf16.gmra.mxu1 %vm498_vm3, %v537_v59  ;;  %2140 = vmatmul.msk.bf16.gmra.mxu2 %vm498_vm3, %v537_v59 }
 0x27f   :  { %2164 = vmatmul.msk.bf16.vlgmr.msra.gmra.mxu2 %vm498_vm3, %v3031_v13 }
 0x2e2   :  { %v661_v61 = vpop.f32.mrf.mxu2 }
 0x2e3   :  { %v662_v3 = vadd.f32 %v661_v61, %v593_v60 }
 0x2e5   :  { %v675_v6 = vmul.f32 0.01, %v662_v3  ;;  %vm671_vm9 = vcmp.gt.f32.partialorder %v662_v3, 0.0 }
 0x2e7   :  { %v679_v13 = vsel %vm671_vm9, %v662_v3, %v675_v6 }
 0x2e8   :  { %v684_v21 = vsel %vm683_vm11, %v679_v13, -inf }
 0x2ea   :  { %v663_v63 = vpop.f32.mrf.mxu2 }
 0x2eb   :  { %v664_v2 = vadd.f32 %v663_v63, %v595_v62  ;;  %v2389_v63 = vld [vmem:[#allocation10] ss:$0 sm:$0xff] }
 0x2ed   :  { %v676_v5 = vmul.f32 0.01, %v664_v2  ;;  %vm672_vm8 = vcmp.gt.f32.partialorder %v664_v2, 0.0 }
 0x2ef   :  { %v680_v10 = vsel %vm672_vm8, %v664_v2, %v676_v5 }
 0x2f0   :  { %v685_v19 = vsel %vm683_vm11, %v680_v10, -inf }
 0x2f1   :  { %v688_v24 = vmax.f32 %v684_v21, %v685_v19 }
 0x2f2   :  { %v666_v1 = vpop.f32.mrf.mxu2 }
 0x2f3   :  { %v667_v4 = vadd.f32 %v666_v1, %v598_v0 }
 0x2f5   :  { %v677_v7 = vmul.f32 0.01, %v667_v4  ;;  %vm673_vm10 = vcmp.gt.f32.partialorder %v667_v4, 0.0 }
 0x2f7   :  { %v681_v17 = vsel %vm673_vm10, %v667_v4, %v677_v7  ;;  %v630_v7 = vpop.f32.mrf.mxu1 }
 0x2f8   :  { %v686_v22 = vsel %vm683_vm11, %v681_v17, -inf }
 0x2fa   :  { %v668_v9 = vpop.f32.mrf.mxu2 }
 0x2fb   :  { %v669_v16 = vadd.f32 %v668_v9, %v600_v8 }
 0x2fd   :  { %vm674_vm12 = vcmp.gt.f32.partialorder %v669_v16, 0.0  ;;  %v678_v18 = vmul.f32 0.01, %v669_v16 }
 0x2ff   :  { %v682_v20 = vsel %vm674_vm12, %v669_v16, %v678_v18  ;;  %v632_v8 = vpop.f32.mrf.mxu1 }
 0x300   :  { %v687_v23 = vsel %vm683_vm11, %v682_v20, -inf }
 0x301   :  { %v689_v25 = vmax.f32 %v686_v22, %v687_v23 }
 0x302   :  { %v886_v58 = vpop.f32.mrf.mxu2 }
 0x303   :  { %v690_v26 = vmax.f32 %v688_v24, %v689_v25  ;;  %v887_v6 = vadd.f32 %v2389_v63, %v886_v58  ;;  %v2321_v25 = vld [vmem:[%s3332_s25 + $0x8] sm:$0xff] }
 0x304   :  { %854 = vmatpush.bf16.msra.mxu1 %v2321_v25 }
 0x305   :  { %v691_v27 = vrot.slane %v690_v26, 4 }
 0x307   :  { %v692_v28 = vmax.f32 %v690_v26, %v691_v27  ;;  %v635_v9 = vpop.f32.mrf.mxu1  ;;  %v2320_v26 = vld [vmem:[%s3332_s25] sm:$0xff] }
 0x308   :  { %855 = vmatpush.bf16.msra.mxu1 %v2320_v26  ;;  %v2390_v27 = vld [vmem:[#allocation7] ss:$0 sm:$0xff] }
 0x309   :  { %v693_v29 = vrot.slane %v692_v28, 2 }
 0x30a   :  { %v888_v62 = vpop.f32.mrf.mxu2 }
 0x30b   :  { %v694_v30 = vmax.f32 %v692_v28, %v693_v29  ;;  %v889_v1 = vadd.f32 %v2389_v63, %v888_v62 }
 0x30d   :  { %v695_v31 = vrot.slane %v694_v30, 1 }
 0x30f   :  { %v696_v32 = vmax.f32 %v694_v30, %v695_v31 }
 0x311   :  { %v700_v33 = vsub.f32 %v682_v20, %v696_v32  ;;  %v699_v35 = vsub.f32 %v681_v17, %v696_v32  ;;  %v697_v37 = vsub.f32 %v679_v13, %v696_v32  ;;  %v698_v38 = vsub.f32 %v680_v10, %v696_v32  ;;  %v637_v13 = vpop.f32.mrf.mxu1 }
 0x313   :  { %v707_v39 = vmul.f32 1.442695, %v700_v33  ;;  %v705_v40 = vmul.f32 1.442695, %v699_v35  ;;  %v701_v41 = vmul.f32 1.442695, %v697_v37 }
 0x314   :  { %v703_v42 = vmul.f32 1.442695, %v698_v38 }
 0x315   :  { %2399 = vpow2.f32 %v707_v39 }
 0x316   :  { %2401 = vpow2.f32 %v705_v40 }
 0x317   :  { %2403 = vpow2.f32 %v701_v41 }
 0x318   :  { %2405 = vpow2.f32 %v703_v42 }
 0x31b   :  { %v2400_v43 = vpop.eup %2399 }
 0x31c   :  { %v2402_v44 = vpop.eup %2401 }
 0x31d   :  { %v2404_v45 = vpop.eup %2403  ;;  %v710_v46 = vpack.c.bf16 %v2400_v43, %v2402_v44 }
 0x31e   :  { %v2406_v47 = vpop.eup %2405 }
 0x31f   :  { %738 = vmatpush.bf16.msrb.mxu3 %v710_v46  ;;  %v709_v48 = vpack.c.bf16 %v2406_v47, %v2404_v45 }
 0x323   :  { %739 = vmatpush.bf16.msrb.mxu3 %v709_v48 }
 0x326   :  { %2141 = vmatmul.msk.bf16.vlgmr.msrb.gmra.mxu3 %vm498_vm3, %v3082_v49 }
 0x3a9   :  { %v741_v50 = vpop.f32.mrf.mxu3 }
 0x3b1   :  { %v743_v51 = vpop.f32.mrf.mxu3 }
 0x3b2   :  { %v746_v52 = vpack.c.bf16 %v743_v51, %v741_v50 }
 0x3b4   :  { %754 = vmatpush.bf16.msra.mxu3 %v746_v52 }
 0x3b7   :  { %2142 = vmatmul.msk.bf16.vlgmr.msra.gmra.mxu3 %vm383_vm0, %v3059_v34 }
 0x3c7   :  { %2143 = vmatmul.msk.bf16.gmra.mxu3 %vm383_vm0, %v3065_v36 }
 0x43a   :  { %v756_v54 = vpop.f32.mrf.mxu3 }
 0x43b   :  { %2407 = vrcp.f32 %v756_v54 }
 0x441   :  { %v2408_v55 = vpop.eup %2407 }
 0x442   :  { %v758_v56 = vpop.f32.mrf.mxu3  ;;  %v770_v57 = vmul.f32 %v2408_v55, %v2404_v45  ;;  %v2391_v45 = vld [vmem:[#allocation11] ss:$0 sm:$0xff] }
 0x443   :  { %2409 = vrcp.f32 %v758_v56 }
 0x444   :  { %776 = vperm.xlu2 %2386, %v770_v57  }
 0x449   :  { %v2410_v59 = vpop.eup %2409 }
 0x44a   :  { %v761_v60 = vpop.f32.mrf.mxu3  ;;  %v771_v61 = vmul.f32 %v2410_v59, %v2406_v47 }
 0x44b   :  { %2411 = vrcp.f32 %v761_v60 }
 0x44c   :  { %781 = vperm.xlu2 %2386, %v771_v61  }
 0x451   :  { %v2412_v0 = vpop.eup %2411 }
 0x452   :  { %v763_v2 = vpop.f32.mrf.mxu3  ;;  %v772_v3 = vmul.f32 %v2412_v0, %v2402_v44 }
 0x453   :  { %2413 = vrcp.f32 %v763_v2 }
 0x454   :  { %935 = vrot.lane.b32.xlu2 %v889_v1, %s2783_s8  ;;  %786 = vperm.xlu1 %2385, %v772_v3  }
 0x459   :  { %v2414_v4 = vpop.eup %2413 }
 0x45a   :  { %v773_v5 = vmul.f32 %v2414_v4, %v2400_v43 }
 0x45c   :  { %791 = vperm.xlu1 %2385, %v773_v5  }
 0x464   :  { %933 = vrot.lane.b32.xlu1 %v887_v6, %s2783_s8 }
 0x49e   :  { %v777_v10 = vpop.permute.xlu2 %776 }
 0x49f   :  { %v794_v23 = vmul.f32 %v777_v10, %v630_v7 }
 0x4a6   :  { %v782_v17 = vpop.permute.xlu2 %781 }
 0x4a7   :  { %v795_v21 = vmul.f32 %v782_v17, %v632_v8 }
 0x4a9   :  { %v798_v24 = vpack.c.bf16 %v795_v21, %v794_v23 }
 0x4c6   :  { %v787_v16 = vpop.permute.xlu1 %786 }
 0x4c7   :  { %v796_v19 = vmul.f32 %v787_v16, %v635_v9 }
 0x4ce   :  { %v792_v18 = vpop.permute.xlu1 %791 }
 0x4cf   :  { %v797_v20 = vmul.f32 %v792_v18, %v637_v13 }
 0x4d1   :  { %v799_v22 = vpack.c.bf16 %v797_v20, %v796_v19  ;;  %v936_v20 = vpop.permute.xlu2 %935 }
 0x4d3   :  { %809 = vmatpush.bf16.msrb.mxu0 %v799_v22 }
 0x4d7   :  { %810 = vmatpush.bf16.msrb.mxu0 %v798_v24 }
 0x4da   :  { %2144 = vmatmul.msk.bf16.vlgmr.msrb.gmra.mxu0 %vm498_vm3, %v3082_v49 }
 0x557   :  { %v812_v28 = vpop.f32.mrf.mxu0 }
 0x558   :  { %v813_v29 = vadd.f32 %v2390_v27, %v812_v28 }
 0x55a   :  { %v819_v30 = vmin.f32 %v813_v29, 0.0  ;;  %vm817_vm13 = vcmp.gt.f32.partialorder %v813_v29, 0.0 }
 0x55c   :  { %v821_v31 = vmul.f32 1.442695, %v819_v30  ;;  %v2307_v30 = vld [vmem:[%s3333_s14] sm:$0xff] }
 0x55e   :  { %2415 = vpow2.f32 %v821_v31 }
 0x55f   :  { %v814_v32 = vpop.f32.mrf.mxu0 }
 0x560   :  { %v815_v33 = vadd.f32 %v2390_v27, %v814_v32 }
 0x562   :  { %v820_v35 = vmin.f32 %v815_v33, 0.0  ;;  %vm818_vm14 = vcmp.gt.f32.partialorder %v815_v33, 0.0 }
 0x564   :  { %v823_v37 = vmul.f32 1.442695, %v820_v35  ;;  %v2416_v38 = vpop.eup %2415 }
 0x565   :  { %v2145_v39 = vadd.f32 -1.0, %v2416_v38 }
 0x566   :  { %2417 = vpow2.f32 %v823_v37 }
 0x567   :  { %v827_v42 = vsel %vm817_vm13, %v813_v29, %v2145_v39  ;;  %v2308_v29 = vld [vmem:[%s3333_s14 + $0x8] sm:$0xff] }
 0x568   :  { %1004 = vmatpush.bf16.msra.mxu0 %v2308_v29 }
 0x56c   :  { %v2418_v40 = vpop.eup %2417  ;;  %1005 = vmatpush.bf16.msra.mxu0 %v2307_v30 }
 0x56d   :  { %v2146_v41 = vadd.f32 -1.0, %v2418_v40 }
 0x56f   :  { %v828_v43 = vsel %vm818_vm14, %v815_v33, %v2146_v41 }
 0x570   :  { %v829_v44 = vpack.c.bf16 %v828_v43, %v827_v42 }
 0x572   :  { %2155 = vmatmul.msk.bf16.vlgmr.msra.gmra.mxu1 %vm498_vm3, %v829_v44 }
 0x5ef   :  { %v857_v46 = vpop.f32.mrf.mxu1 }
 0x5f0   :  { %v858_v47 = vadd.f32 %v2391_v45, %v857_v46 }
 0x5f2   :  { %v891_v48 = vadd.f32 %v887_v6, %v858_v47  ;;  %v934_v6 = vpop.permute.xlu1 %933 }
 0x5f4   :  { %v2165_v50 = vmul.f32 -1.442695, %v891_v48  ;;  %v2301_v48 = vld [vmem:[%s3334_s4] sm:$0xff] }
 0x5f6   :  { %2419 = vpow2.f32 %v2165_v50 }
 0x5f7   :  { %v859_v51 = vpop.f32.mrf.mxu1 }
 0x5f8   :  { %v860_v52 = vadd.f32 %v2391_v45, %v859_v51 }
 0x5fa   :  { %v892_v53 = vadd.f32 %v889_v1, %v860_v52 }
 0x5fc   :  { %v2420_v54 = vpop.eup %2419  ;;  %v2166_v55 = vmul.f32 -1.442695, %v892_v53 }
 0x5fd   :  { %v899_v56 = vadd.f32 1.0, %v2420_v54 }
 0x5fe   :  { %2421 = vpow2.f32 %v2166_v55  ;;  %v2304_v55 = vld [vmem:[%s3335_s11 + $0x8] sm:$0xff] }
 0x5ff   :  { %2423 = vrcp.f32 %v899_v56  ;;  %v912_v62 = vand.u32 2147483648, %v899_v56  ;;  %v910_v0 = vand.u32 2147483647, %v899_v56  ;;  %vm906_vm1 = vweird.f32 %v899_v56 }
 0x601   :  { %v913_v1 = vor.u32 1.1754944e-38, %v912_v62  ;;  %vm911_vm4 = vcmp.eq.f32.partialorder %v910_v0, 8.507059e+37 }
 0x604   :  { %v2422_v57 = vpop.eup %2421 }
 0x605   :  { %v2424_v58 = vpop.eup %2423  ;;  %v900_v59 = vadd.f32 1.0, %v2422_v57  ;;  %v2303_v57 = vld [vmem:[%s3335_s11] sm:$0xff] }
 0x606   :  { %v902_v60 = vmul.f32 %v2424_v58, %v899_v56  ;;  %vm907_vm15 = vweird.f32 %v2424_v58 }
 0x607   :  { %2425 = vrcp.f32 %v900_v59  ;;  %vm908_vm2 = vmor %vm906_vm1, %vm907_vm15  ;;  %v927_v10 = vand.u32 2147483648, %v900_v59  ;;  %v925_v13 = vand.u32 2147483647, %v900_v59  ;;  %vm921_vm6 = vweird.f32 %v900_v59 }
 0x608   :  { %v903_v61 = vsub.f32 1.0, %v902_v60 }
 0x609   :  { %v928_v18 = vor.u32 1.1754944e-38, %v927_v10  ;;  %vm926_vm8 = vcmp.eq.f32.partialorder %v925_v13, 8.507059e+37 }
 0x60a   :  { %v904_v63 = vmul.f32 %v2424_v58, %v903_v61 }
 0x60c   :  { %v905_v2 = vadd.f32 %v2424_v58, %v904_v63 }
 0x60d   :  { %v2426_v3 = vpop.eup %2425 }
 0x60e   :  { %v909_v4 = vsel %vm908_vm2, %v2424_v58, %v905_v2  ;;  %v917_v5 = vmul.f32 %v2426_v3, %v900_v59  ;;  %vm922_vm5 = vweird.f32 %v2426_v3 }
 0x60f   :  { %v914_v7 = vsel %vm911_vm4, %v913_v1, %v909_v4  ;;  %vm923_vm7 = vmor %vm921_vm6, %vm922_vm5 }
 0x610   :  { %v939_v8 = vmul.f32 %v934_v6, %v914_v7  ;;  %v918_v9 = vsub.f32 1.0, %v917_v5  ;;  %v953_v35 = vsub.f32 1.0, %v914_v7 }
 0x612   :  { %943 = vrot.lane.b32.xlu0 %v939_v8, %s2783_s8  ;;  %v919_v16 = vmul.f32 %v2426_v3, %v918_v9 }
 0x614   :  { %v920_v17 = vadd.f32 %v2426_v3, %v919_v16 }
 0x616   :  { %v924_v19 = vsel %vm923_vm7, %v2426_v3, %v920_v17 }
 0x617   :  { %v929_v21 = vsel %vm926_vm8, %v928_v18, %v924_v19 }
 0x618   :  { %v940_v22 = vmul.f32 %v936_v20, %v929_v21  ;;  %v954_v39 = vsub.f32 1.0, %v929_v21 }
 0x61a   :  { %945 = vrot.lane.b32.xlu1 %v940_v22, %s2783_s8 }
 0x684   :  { %v944_v23 = vpop.permute.xlu0 %943 }
 0x685   :  { %v949_v24 = vadd.f32 %v944_v23, %v858_v47  ;;  %v2302_v47 = vld [vmem:[%s3334_s4 + $0x8] sm:$0xff] }
 0x686   :  { %1034 = vmatpush.bf16.msrb.mxu1 %v2302_v47 }
 0x687   :  { %2427 = vtanh.f32 %v949_v24 }
 0x68a   :  { %1035 = vmatpush.bf16.msrb.mxu1 %v2301_v48 }
 0x68c   :  { %v946_v25 = vpop.permute.xlu1 %945 }
 0x68d   :  { %v2428_v26 = vpop.eup %2427  ;;  %v950_v27 = vadd.f32 %v946_v25, %v860_v52 }
 0x68e   :  { %957 = vrot.lane.b32.xlu2 %v2428_v26, %s2793_s6 }
 0x68f   :  { %2429 = vtanh.f32 %v950_v27 }
 0x695   :  { %v2430_v28 = vpop.eup %2429 }
 0x696   :  { %959 = vrot.lane.b32.xlu1 %v2430_v28, %s2793_s6  ;;  %967 = vrot.lane.b32.xlu2 %v3025_v11, %s2794_s27 }
 0x69e   :  { %969 = vrot.lane.b32.xlu1 %v3027_v12, %s2794_s27 }
 0x6e8   :  { %v958_v31 = vpop.permute.xlu2 %957 }
 0x6e9   :  { %v963_v38 = vmul.f32 %v958_v31, %v953_v35 }
 0x6f0   :  { %v968_v33 = vpop.permute.xlu2 %967 }
 0x6f1   :  { %v973_v37 = vmul.f32 %v968_v33, %v914_v7 }
 0x6f3   :  { %v3107_v41 = vadd.f32 %v973_v37, %v963_v38 }
 0x6f5   :  { %v977_v12 = vmax.f32 %v3107_v41, 0.0 }
 0x708   :  { %v960_v32 = vpop.permute.xlu1 %959 }
 0x709   :  { %v964_v11 = vmul.f32 %v960_v32, %v954_v39 }
 0x710   :  { %v970_v40 = vpop.permute.xlu1 %969 }
 0x711   :  { %v974_v42 = vmul.f32 %v970_v40, %v929_v21 }
 0x713   :  { %v3109_v43 = vadd.f32 %v974_v42, %v964_v11 }
 0x715   :  { %v978_v44 = vmax.f32 %v3109_v43, 0.0  ;;  %v2327_v43 = vld [vmem:[%s3339_s7] sm:$0xff] }
 0x717   :  { %v979_v45 = vpack.c.bf16 %v978_v44, %v977_v12 }
 0x719   :  { %981 = vrot.lane.b32.xlu2 %v979_v45, %s2793_s6 }
 0x773   :  { %v982_v46 = vpop.permute.xlu2 %981 }
 0x774   :  { %2175 = vmatmul.msk.bf16.vlgmr.msra.gmra.mxu0 %vm498_vm3, %v982_v46 }
 0x7f1   :  { %v1007_v50 = vpop.f32.mrf.mxu0 }
 0x7f9   :  { %v1009_v51 = vpop.f32.mrf.mxu0 }
 0x7fa   :  { %v1012_v52 = vpack.c.bf16 %v1009_v51, %v1007_v50 }
 0x7fc   :  { %2184 = vmatmul.msk.bf16.vlgmr.msrb.gmra.mxu1 %vm498_vm3, %v1012_v52  ;;  %1073 = vmatpush.bf16.msrb.mxu3 %v1012_v52 }
 0x7ff   :  { %2187 = vmatmul.msk.bf16.vlgmr.msrb.gmra.mxu3 %vm383_vm0, %v3034_v14 }
 0x80f   :  { %2188 = vmatmul.msk.bf16.gmra.mxu3 %vm383_vm0, %v3042_v15 }
 0x879   :  { %v1037_v53 = vpop.f32.mrf.mxu1 }
 0x881   :  { %v1039_v54 = vpop.f32.mrf.mxu1 }
 0x882   :  { %v1042_v56 = vpack.c.bf16 %v1039_v54, %v1037_v53 }
 0x884   :  { %1044 = vrot.lane.b32.xlu1 %v1042_v56, %s2795_s28  ;;  %1092 = vmatpush.bf16.msrb.mxu0 %v1042_v56 }
 0x887   :  { %2189 = vmatmul.msk.bf16.vlgmr.msrb.gmra.mxu0 %vm383_vm0, %v3034_v14 }
 0x888   :  { %1294 = vmatpush.bf16.msra.mxu0 %v2304_v55 }
 0x88c   :  { %1295 = vmatpush.bf16.msra.mxu0 %v2303_v57 }
 0x897   :  { %2190 = vmatmul.msk.bf16.gmra.mxu0 %vm383_vm0, %v3042_v15 }
 0x8a7   :  { %2214 = vmatmul.msk.bf16.vlgmr.msra.gmra.mxu0 %vm498_vm3, %v982_v46 }
 0x8f6   :  { %v1045_v58 = vpop.permute.xlu1 %1044 }
 0x8f7   :  { %1054 = vmatpush.bf16.msrb.mxu2 %v1045_v58 }
 0x8fa   :  { %2185 = vmatmul.msk.bf16.vlgmr.msrb.gmra.mxu2 %vm383_vm0, %v3059_v34 }
 0x904   :  { %v1094_v59 = vpop.f32.mrf.mxu0 }
 0x90a   :  { %2186 = vmatmul.msk.bf16.gmra.mxu2 %vm383_vm0, %v3065_v36 }
 0x90c   :  { %v1096_v61 = vpop.f32.mrf.mxu0 }
 0x914   :  { %v1099_v63 = vpop.f32.mrf.mxu0 }
 0x91c   :  { %v1101_v5 = vpop.f32.mrf.mxu0 }
 0x97d   :  { %v1056_v60 = vpop.f32.mrf.mxu2 }
 0x97e   :  { %v1095_v2 = vadd.f32 %v1094_v59, %v1056_v60 }
 0x980   :  { %v1108_v1 = vmul.f32 0.01, %v1095_v2  ;;  %vm1104_vm10 = vcmp.gt.f32.partialorder %v1095_v2, 0.0 }
 0x982   :  { %v1112_v9 = vsel %vm1104_vm10, %v1095_v2, %v1108_v1  ;;  %vm1536_vm10 = vcmask 1040384  }
 0x983   :  { %v1116_v18 = vsel %vm683_vm11, %v1112_v9, -inf }
 0x985   :  { %v1058_v62 = vpop.f32.mrf.mxu2 }
 0x986   :  { %v1097_v0 = vadd.f32 %v1096_v61, %v1058_v62  ;;  %v2392_v62 = vld [vmem:[#allocation2] ss:$0 sm:$0xff] }
 0x988   :  { %v1109_v15 = vmul.f32 0.01, %v1097_v0  ;;  %vm1105_vm9 = vcmp.gt.f32.partialorder %v1097_v0, 0.0 }
 0x98a   :  { %v1113_v7 = vsel %vm1105_vm9, %v1097_v0, %v1109_v15 }
 0x98b   :  { %v1117_v13 = vsel %vm683_vm11, %v1113_v7, -inf }
 0x98c   :  { %v1120_v21 = vmax.f32 %v1116_v18, %v1117_v13 }
 0x98d   :  { %v1061_v14 = vpop.f32.mrf.mxu2 }
 0x98e   :  { %v1100_v3 = vadd.f32 %v1099_v63, %v1061_v14 }
 0x990   :  { %v1110_v4 = vmul.f32 0.01, %v1100_v3  ;;  %vm1106_vm12 = vcmp.gt.f32.partialorder %v1100_v3, 0.0 }
 0x992   :  { %v1114_v10 = vsel %vm1106_vm12, %v1100_v3, %v1110_v4  ;;  %v1075_v3 = vpop.f32.mrf.mxu3  ;;  %vm1532_vm12 = vcmask 15360  }
 0x993   :  { %v1118_v19 = vsel %vm683_vm11, %v1114_v10, -inf }
 0x995   :  { %v1063_v6 = vpop.f32.mrf.mxu2 }
 0x996   :  { %v1102_v8 = vadd.f32 %v1101_v5, %v1063_v6 }
 0x998   :  { %vm1107_vm13 = vcmp.gt.f32.partialorder %v1102_v8, 0.0  ;;  %v1111_v16 = vmul.f32 0.01, %v1102_v8 }
 0x99a   :  { %v1115_v17 = vsel %vm1107_vm13, %v1102_v8, %v1111_v16  ;;  %v1077_v15 = vpop.f32.mrf.mxu3 }
 0x99b   :  { %v1119_v20 = vsel %vm683_vm11, %v1115_v17, -inf }
 0x99c   :  { %v1121_v22 = vmax.f32 %v1118_v19, %v1119_v20  ;;  %v2306_v19 = vld [vmem:[%s3336_s2 + $0x8] sm:$0xff]  ;;  %v2305_v20 = vld [vmem:[%s3336_s2] sm:$0xff] }
 0x99d   :  { %1265 = vmatpush.bf16.msra.mxu3 %v2306_v19 }
 0x99e   :  { %v1122_v23 = vmax.f32 %v1120_v21, %v1121_v22  ;;  %v2393_v21 = vld [vmem:[%s3337_s3] ss:$0 sm:$0xff] }
 0x9a0   :  { %v1123_v24 = vrot.slane %v1122_v23, 4 }
 0x9a1   :  { %1266 = vmatpush.bf16.msra.mxu3 %v2305_v20  ;;  %v3160_v20 = vld [vmem:[%s3338_s1] sm:$0xff] }
 0x9a2   :  { %v1124_v25 = vmax.f32 %v1122_v23, %v1123_v24  ;;  %v1080_v1 = vpop.f32.mrf.mxu3 }
 0x9a4   :  { %v1125_v26 = vrot.slane %v1124_v25, 2 }
 0x9a6   :  { %v1126_v27 = vmax.f32 %v1124_v25, %v1125_v26 }
 0x9a8   :  { %v1127_v28 = vrot.slane %v1126_v27, 1 }
 0x9aa   :  { %v1128_v29 = vmax.f32 %v1126_v27, %v1127_v28  ;;  %v1082_v5 = vpop.f32.mrf.mxu3 }
 0x9ac   :  { %v1132_v30 = vsub.f32 %v1115_v17, %v1128_v29  ;;  %v1131_v31 = vsub.f32 %v1114_v10, %v1128_v29  ;;  %v1129_v32 = vsub.f32 %v1112_v9, %v1128_v29  ;;  %v1130_v33 = vsub.f32 %v1113_v7, %v1128_v29 }
 0x9ae   :  { %v1139_v35 = vmul.f32 1.442695, %v1132_v30  ;;  %v1137_v37 = vmul.f32 1.442695, %v1131_v31  ;;  %v1133_v38 = vmul.f32 1.442695, %v1129_v32 }
 0x9af   :  { %v1135_v39 = vmul.f32 1.442695, %v1130_v33 }
 0x9b0   :  { %2431 = vpow2.f32 %v1139_v35 }
 0x9b1   :  { %2433 = vpow2.f32 %v1137_v37 }
 0x9b2   :  { %2435 = vpow2.f32 %v1133_v38  ;;  %v2394_v38 = vld [vmem:[#allocation5] ss:$0 sm:$0xff] }
 0x9b3   :  { %2437 = vpow2.f32 %v1135_v39 }
 0x9b6   :  { %v2432_v40 = vpop.eup %2431 }
 0x9b7   :  { %v2434_v11 = vpop.eup %2433 }
 0x9b8   :  { %v2436_v42 = vpop.eup %2435  ;;  %v1142_v45 = vpack.c.bf16 %v2432_v40, %v2434_v11 }
 0x9b9   :  { %v2438_v46 = vpop.eup %2437 }
 0x9ba   :  { %1149 = vmatpush.bf16.msra.mxu1 %v1142_v45  ;;  %v1141_v47 = vpack.c.bf16 %v2438_v46, %v2436_v42 }
 0x9be   :  { %1150 = vmatpush.bf16.msra.mxu1 %v1141_v47 }
 0x9c1   :  { %2191 = vmatmul.msk.bf16.vlgmr.msra.gmra.mxu1 %vm498_vm3, %v3082_v49 }
 0xa3e   :  { %v1152_v48 = vpop.f32.mrf.mxu1 }
 0xa46   :  { %v1154_v50 = vpop.f32.mrf.mxu1 }
 0xa47   :  { %v1157_v51 = vpack.c.bf16 %v1154_v50, %v1152_v48 }
 0xa49   :  { %1165 = vmatpush.bf16.msrb.mxu1 %v1157_v51 }
 0xa4c   :  { %2192 = vmatmul.msk.bf16.vlgmr.msrb.gmra.mxu1 %vm383_vm0, %v3059_v34  ;;  %v1297_v34 = vpop.f32.mrf.mxu0 }
 0xa4d   :  { %v1298_v63 = vadd.f32 %v2392_v62, %v1297_v34 }
 0xa54   :  { %v1299_v0 = vpop.f32.mrf.mxu0 }
 0xa55   :  { %v1300_v2 = vadd.f32 %v2392_v62, %v1299_v0 }
 0xa5c   :  { %2193 = vmatmul.msk.bf16.gmra.mxu1 %vm383_vm0, %v3065_v36 }
 0xac9   :  { %v1167_v52 = vpop.f32.mrf.mxu1 }
 0xad1   :  { %v1169_v53 = vpop.f32.mrf.mxu1 }
 0xad9   :  { %v1172_v54 = vpop.f32.mrf.mxu1 }
 0xada   :  { %2439 = vrcp.f32 %v1172_v54 }
 0xadb   :  { %2441 = vrcp.f32 %v1167_v52 }
 0xae0   :  { %v2440_v55 = vpop.eup %2439 }
 0xae1   :  { %v1174_v56 = vpop.f32.mrf.mxu1  ;;  %v1183_v57 = vmul.f32 %v2440_v55, %v2434_v11  ;;  %v2442_v58 = vpop.eup %2441 }
 0xae2   :  { %2443 = vrcp.f32 %v1174_v56  ;;  %v1181_v60 = vmul.f32 %v2442_v58, %v2436_v42 }
 0xae3   :  { %1197 = vperm.xlu2 %2386, %v1183_v57   ;;  %2445 = vrcp.f32 %v1169_v53 }
 0xae8   :  { %v2444_v59 = vpop.eup %2443 }
 0xae9   :  { %v1184_v61 = vmul.f32 %v2444_v59, %v2432_v40  ;;  %v2446_v36 = vpop.eup %2445 }
 0xaea   :  { %v1182_v14 = vmul.f32 %v2446_v36, %v2438_v46 }
 0xaeb   :  { %1187 = vperm.xlu2 %2386, %v1181_v60   ;;  %1202 = vperm.xlu1 %2385, %v1184_v61  }
 0xaf3   :  { %1344 = vrot.lane.b32.xlu2 %v1298_v63, %s2783_s8  ;;  %1192 = vperm.xlu1 %2385, %v1182_v14  }
 0xafb   :  { %1346 = vrot.lane.b32.xlu1 %v1300_v2, %s2783_s8 }
 0xb3d   :  { %v1198_v4 = vpop.permute.xlu2 %1197 }
 0xb3e   :  { %v1207_v7 = vmul.f32 %v1198_v4, %v1080_v1 }
 0xb45   :  { %v1188_v10 = vpop.permute.xlu2 %1187 }
 0xb46   :  { %v1205_v13 = vmul.f32 %v1188_v10, %v1075_v3 }
 0xb5d   :  { %v1203_v6 = vpop.permute.xlu1 %1202 }
 0xb5e   :  { %v1208_v8 = vmul.f32 %v1203_v6, %v1082_v5 }
 0xb60   :  { %v1210_v9 = vpack.c.bf16 %v1208_v8, %v1207_v7 }
 0xb62   :  { %1220 = vmatpush.bf16.msra.mxu2 %v1210_v9 }
 0xb65   :  { %v1193_v16 = vpop.permute.xlu1 %1192 }
 0xb66   :  { %v1206_v17 = vmul.f32 %v1193_v16, %v1077_v15 }
 0xb68   :  { %v1209_v18 = vpack.c.bf16 %v1206_v17, %v1205_v13 }
 0xb6a   :  { %1221 = vmatpush.bf16.msra.mxu2 %v1209_v18 }
 0xb6d   :  { %2194 = vmatmul.msk.bf16.vlgmr.msra.gmra.mxu2 %vm498_vm3, %v3082_v49  ;;  %v1347_v7 = vpop.permute.xlu1 %1346 }
 0xbf0   :  { %v1223_v22 = vpop.f32.mrf.mxu2 }
 0xbf1   :  { %v1224_v23 = vadd.f32 %v2393_v21, %v1223_v22  ;;  %v3166_v22 = vld [vmem:[#allocation16] sm:$0xff] }
 0xbf3   :  { %v1230_v24 = vmin.f32 %v1224_v23, 0.0  ;;  %vm1228_vm14 = vcmp.gt.f32.partialorder %v1224_v23, 0.0 }
 0xbf5   :  { %v1232_v25 = vmul.f32 1.442695, %v1230_v24 }
 0xbf7   :  { %2447 = vpow2.f32 %v1232_v25 }
 0xbf8   :  { %v1225_v26 = vpop.f32.mrf.mxu2 }
 0xbf9   :  { %v1226_v27 = vadd.f32 %v2393_v21, %v1225_v26  ;;  %v3163_v21 = vld [vmem:[#allocation16 + $0x8] sm:$0xff] }
 0xbfa   :  { %1447 = vmatpush.bf16.msrb.mxu3 %v3163_v21  ;;  %1495 = vmatpush.bf16.msra.mxu1 %v3163_v21 }
 0xbfb   :  { %v1231_v28 = vmin.f32 %v1226_v27, 0.0  ;;  %vm1229_vm15 = vcmp.gt.f32.partialorder %v1226_v27, 0.0 }
 0xbfd   :  { %v1234_v29 = vmul.f32 1.442695, %v1231_v28  ;;  %v2448_v30 = vpop.eup %2447 }
 0xbfe   :  { %v2195_v31 = vadd.f32 -1.0, %v2448_v30  ;;  %1448 = vmatpush.bf16.msrb.mxu3 %v3166_v22  ;;  %1496 = vmatpush.bf16.msra.mxu1 %v3166_v22 }
 0xbff   :  { %2449 = vpow2.f32 %v1234_v29 }
 0xc00   :  { %v1238_v49 = vsel %vm1228_vm14, %v1224_v23, %v2195_v31 }
 0xc05   :  { %v2450_v32 = vpop.eup %2449 }
 0xc06   :  { %v2196_v33 = vadd.f32 -1.0, %v2450_v32 }
 0xc08   :  { %v1239_v35 = vsel %vm1229_vm15, %v1226_v27, %v2196_v33 }
 0xc09   :  { %v1240_v37 = vpack.c.bf16 %v1239_v35, %v1238_v49 }
 0xc0b   :  { %2205 = vmatmul.msk.bf16.vlgmr.msra.gmra.mxu3 %vm498_vm3, %v1240_v37 }
 0xc8e   :  { %v1268_v39 = vpop.f32.mrf.mxu3 }
 0xc8f   :  { %v1269_v40 = vadd.f32 %v2394_v38, %v1268_v39 }
 0xc91   :  { %v1302_v11 = vadd.f32 %v1298_v63, %v1269_v40  ;;  %v1345_v63 = vpop.permute.xlu2 %1344 }
 0xc93   :  { %v2215_v42 = vmul.f32 -1.442695, %v1302_v11 }
 0xc95   :  { %2451 = vpow2.f32 %v2215_v42 }
 0xc96   :  { %v1270_v45 = vpop.f32.mrf.mxu3 }
 0xc97   :  { %v1271_v46 = vadd.f32 %v2394_v38, %v1270_v45 }
 0xc99   :  { %v1303_v47 = vadd.f32 %v1300_v2, %v1271_v46 }
 0xc9b   :  { %v2452_v48 = vpop.eup %2451  ;;  %v2216_v50 = vmul.f32 -1.442695, %v1303_v47  ;;  %v3197_v47 = vld [vmem:[%s3340_s10] sm:$0xff] }
 0xc9c   :  { %v1310_v51 = vadd.f32 1.0, %v2452_v48 }
 0xc9d   :  { %2453 = vpow2.f32 %v2216_v50 }
 0xc9e   :  { %2455 = vrcp.f32 %v1310_v51  ;;  %v1323_v57 = vand.u32 2147483648, %v1310_v51  ;;  %v1321_v59 = vand.u32 2147483647, %v1310_v51  ;;  %vm1317_vm2 = vweird.f32 %v1310_v51 }
 0xca0   :  { %v1324_v34 = vor.u32 1.1754944e-38, %v1323_v57  ;;  %vm1322_vm5 = vcmp.eq.f32.partialorder %v1321_v59, 8.507059e+37 }
 0xca3   :  { %v2454_v52 = vpop.eup %2453 }
 0xca4   :  { %v2456_v53 = vpop.eup %2455  ;;  %v1311_v54 = vadd.f32 1.0, %v2454_v52 }
 0xca5   :  { %v1313_v55 = vmul.f32 %v2456_v53, %v1310_v51  ;;  %vm1318_vm1 = vweird.f32 %v2456_v53 }
 0xca6   :  { %2457 = vrcp.f32 %v1311_v54  ;;  %vm1319_vm4 = vmor %vm1317_vm2, %vm1318_vm1  ;;  %v1338_v3 = vand.u32 2147483648, %v1311_v54  ;;  %v1336_v1 = vand.u32 2147483647, %v1311_v54  ;;  %vm1332_vm7 = vweird.f32 %v1311_v54 }
 0xca7   :  { %v1314_v56 = vsub.f32 1.0, %v1313_v55 }
 0xca8   :  { %v1339_v5 = vor.u32 1.1754944e-38, %v1338_v3  ;;  %vm1337_vm9 = vcmp.eq.f32.partialorder %v1336_v1, 8.507059e+37 }
 0xca9   :  { %v1315_v58 = vmul.f32 %v2456_v53, %v1314_v56 }
 0xcab   :  { %v1316_v60 = vadd.f32 %v2456_v53, %v1315_v58 }
 0xcac   :  { %v2458_v61 = vpop.eup %2457 }
 0xcad   :  { %v1320_v62 = vsel %vm1319_vm4, %v2456_v53, %v1316_v60  ;;  %v1328_v36 = vmul.f32 %v2458_v61, %v1311_v54  ;;  %vm1333_vm6 = vweird.f32 %v2458_v61 }
 0xcae   :  { %v1325_v14 = vsel %vm1322_vm5, %v1324_v34, %v1320_v62  ;;  %vm1334_vm8 = vmor %vm1332_vm7, %vm1333_vm6 }
 0xcaf   :  { %v1350_v0 = vmul.f32 %v1345_v63, %v1325_v14  ;;  %v1329_v2 = vsub.f32 1.0, %v1328_v36  ;;  %v1364_v24 = vsub.f32 1.0, %v1325_v14  ;;  %v1376_v26 = vmul.f32 %v1325_v14, %v977_v12  ;;  %v2328_v12 = vld [vmem:[%s3339_s7 + $0x8] sm:$0xff] }
 0xcb0   :  { %1477 = vmatpush.bf16.msrb.mxu0 %v2328_v12 }
 0xcb1   :  { %1354 = vrot.lane.b32.xlu2 %v1350_v0, %s2783_s8  ;;  %v1330_v15 = vmul.f32 %v2458_v61, %v1329_v2 }
 0xcb3   :  { %v1331_v4 = vadd.f32 %v2458_v61, %v1330_v15 }
 0xcb4   :  { %1478 = vmatpush.bf16.msrb.mxu0 %v2327_v43 }
 0xcb5   :  { %v1335_v6 = vsel %vm1334_vm8, %v2458_v61, %v1331_v4 }
 0xcb6   :  { %v1340_v8 = vsel %vm1337_vm9, %v1339_v5, %v1335_v6 }
 0xcb7   :  { %v1351_v9 = vmul.f32 %v1347_v7, %v1340_v8  ;;  %v1365_v27 = vsub.f32 1.0, %v1340_v8  ;;  %v1377_v30 = vmul.f32 %v1340_v8, %v978_v44 }
 0xcb9   :  { %1356 = vrot.lane.b32.xlu1 %v1351_v9, %s2783_s8 }
 0xd0b   :  { %v1355_v10 = vpop.permute.xlu2 %1354 }
 0xd0c   :  { %v1360_v16 = vadd.f32 %v1355_v10, %v1269_v40 }
 0xd0e   :  { %2459 = vtanh.f32 %v1360_v16 }
 0xd14   :  { %v2460_v13 = vpop.eup %2459 }
 0xd15   :  { %1368 = vrot.lane.b32.xlu2 %v2460_v13, %s2793_s6 }
 0xd2b   :  { %v1357_v17 = vpop.permute.xlu1 %1356 }
 0xd2c   :  { %v1361_v18 = vadd.f32 %v1357_v17, %v1271_v46  ;;  %v3193_v46 = vld [vmem:[%s3340_s10 + $0x8] sm:$0xff] }
 0xd2d   :  { %v3213_v17 = vld [vmem:[%s2960_s30 + $0x8] sm:$0xff] }
 0xd2e   :  { %2461 = vtanh.f32 %v1361_v18 }
 0xd34   :  { %v2462_v19 = vpop.eup %2461 }
 0xd35   :  { %1370 = vrot.lane.b32.xlu1 %v2462_v19, %s2793_s6  ;;  %v3217_v19 = vld [vmem:[%s2960_s30] sm:$0xff]  ;;  %s3342_s30 = sld [smem:[#allocation38_spill]] }
 0xd6a   :  { %1389 = vxpose.xlu1.c.b16.start.end [1/1] (short) (narrow) %v3160_v20, 16 }
 0xd6f   :  { %v1369_v23 = vpop.permute.xlu2 %1368 }
 0xd70   :  { %v1374_v25 = vmul.f32 %v1369_v23, %v1364_v24 }
 0xd72   :  { %v1378_v29 = vadd.f32 %v1376_v26, %v1374_v25 }
 0xd74   :  { %v1380_v33 = vmax.f32 %v1378_v29, 0.0 }
 0xda7   :  { %v1371_v28 = vpop.permute.xlu1 %1370 }
 0xda8   :  { %v1375_v31 = vmul.f32 %v1371_v28, %v1365_v27 }
 0xdaa   :  { %v1379_v32 = vadd.f32 %v1377_v30, %v1375_v31 }
 0xdac   :  { %v1381_v49 = vmax.f32 %v1379_v32, 0.0 }
 0xdae   :  { %v1382_v35 = vpack.c.bf16 %v1381_v49, %v1380_v33 }
 0xdb0   :  { %1406 = vrot.lane.b32.xlu2 %v1382_v35, %s2793_s6 }
 0xe0a   :  { %v1407_v37 = vpop.permute.xlu2 %1406 }
 0xe0b   :  { %1419 = vmatpush.bf16.msrb.mxu2 %v1407_v37  ;;  %2230 = vmatmul.msk.bf16.vlgmr.msrb.gmra.mxu3 %vm498_vm3, %v1407_v37 }
 0xe0f   :  { %1524 = vmatpush.bf16.msra.mxu2 %v3193_v46 }
 0xe13   :  { %1525 = vmatpush.bf16.msra.mxu2 %v3197_v47 }
 0xe16   :  { %v3177_v41 = vpop.trf.xlu1 }
 0xe17   :  { %2221 = vmatmul.msk.bf16.vlgmr.msrb.gmra.mxu2 %vm383_vm0, %v3177_v41 }
 0xe8e   :  { %v3183_v44 = vpop.f32.mrf.mxu3 }
 0xe96   :  { %v3185_v38 = vpop.f32.mrf.mxu3 }
 0xe97   :  { %v1455_v39 = vpack.c.bf16 %v3185_v38, %v3183_v44 }
 0xe99   :  { %2239 = vmatmul.msk.bf16.vlgmr.msrb.gmra.mxu0 %vm498_vm3, %v1455_v39 }
 0xe9a   :  { %v1421_v40 = vpop.f32.mrf.mxu2 }
 0xe9b   :  { %v1425_v11 = vmax.f32 %v1421_v40, 0.0  ;;  %v3239_v40 = vld [vmem:[#allocation14 + $0x8] sm:$0xff] }
 0xe9d   :  { %v1485_v42 = vpack.c.bf16 %v1425_v11, %v1425_v11  ;;  %1746 = vrot.lane.b32.xlu0 %v1425_v11, %s2794_s27  ;;  %v3242_v11 = vld [vmem:[#allocation14] sm:$0xff] }
 0xe9f   :  { %2240 = vmatmul.msk.bf16.vlgmr.msra.gmra.mxu1 %vm498_vm3, %v1485_v42 }
 0xea2   :  { %v1423_v45 = vpop.f32.mrf.mxu2 }
 0xf16   :  { %v3204_v56 = vpop.f32.mrf.mxu0 }
 0xf1c   :  { %v1498_v48 = vpop.f32.mrf.mxu1 }
 0xf1d   :  { %v1502_v50 = vpack.c.bf16 %v1498_v48, %v1498_v48 }
 0xf1e   :  { %v3207_v60 = vpop.f32.mrf.mxu0 }
 0xf1f   :  { %2249 = vmatmul.msk.bf16.vlgmr.msra.gmra.mxu2 %vm498_vm3, %v1502_v50 }
 0xf24   :  { %v1500_v51 = vpop.f32.mrf.mxu1 }
 0xfa2   :  { %v1527_v52 = vpop.f32.mrf.mxu2 }
 0xfa3   :  { %v1531_v53 = vpack.c.bf16 %v1527_v52, %v1527_v52 }
 0xfa5   :  { %v1538_v54 = vsel %vm1536_vm10, %v1531_v53, 0 }
 0xfa6   :  { %1547 = vmatpush.bf16.msra.mxu3 %v1538_v54 }
 0xfa9   :  { %2250 = vmatmul.msk.bf16.vlgmr.msra.gmra.mxu3 %vm1532_vm12, %v3160_v20 }
 0xfaa   :  { %v1529_v55 = vpop.f32.mrf.mxu2  ;;  %1673 = vmatpush.bf16.msrb.mxu3 %v3239_v40 }
 0xfab   :  { %v3251_v55 = vld [vmem:[%s3343_s16] ss:$0 sm:$0xff] }
 0xfae   :  { %1674 = vmatpush.bf16.msrb.mxu3 %v3242_v11 }
0x102c   :  { %v1549_v57 = vpop.f32.mrf.mxu3 }
0x102d   :  { %v1554_v58 = vadd.f32 %v1549_v57, %v3204_v56 }
0x102f   :  { %v1558_v59 = vmul.f32 0.01, %v1554_v58  ;;  %vm1556_vm13 = vcmp.gt.f32.partialorder %v1554_v58, 0.0 }
0x1031   :  { %v1560_v62 = vsel %vm1556_vm13, %v1554_v58, %v1558_v59 }
0x1032   :  { %v1562_v14 = vsel %vm683_vm11, %v1560_v62, -inf }
0x1034   :  { %v1551_v61 = vpop.f32.mrf.mxu3 }
0x1035   :  { %v1555_v34 = vadd.f32 %v1551_v61, %v3207_v60 }
0x1037   :  { %vm1557_vm14 = vcmp.gt.f32.partialorder %v1555_v34, 0.0  ;;  %v1559_v36 = vmul.f32 0.01, %v1555_v34 }
0x1039   :  { %v1561_v63 = vsel %vm1557_vm14, %v1555_v34, %v1559_v36 }
0x103a   :  { %v1563_v0 = vsel %vm683_vm11, %v1561_v63, -inf }
0x103b   :  { %v1564_v2 = vmax.f32 %v1562_v14, %v1563_v0 }
0x103d   :  { %v1565_v3 = vrot.slane %v1564_v2, 4 }
0x103f   :  { %v1566_v15 = vmax.f32 %v1564_v2, %v1565_v3 }
0x1041   :  { %v1567_v1 = vrot.slane %v1566_v15, 2 }
0x1043   :  { %v1568_v4 = vmax.f32 %v1566_v15, %v1567_v1 }
0x1045   :  { %v1569_v5 = vrot.slane %v1568_v4, 1 }
0x1047   :  { %v1570_v6 = vmax.f32 %v1568_v4, %v1569_v5 }
0x1049   :  { %v1571_v7 = vsub.f32 %v1560_v62, %v1570_v6  ;;  %v1572_v8 = vsub.f32 %v1561_v63, %v1570_v6 }
0x104b   :  { %v1573_v9 = vmul.f32 1.442695, %v1571_v7  ;;  %v1575_v10 = vmul.f32 1.442695, %v1572_v8 }
0x104d   :  { %2463 = vpow2.f32 %v1573_v9 }
0x104e   :  { %2465 = vpow2.f32 %v1575_v10 }
0x1053   :  { %v2464_v16 = vpop.eup %2463 }
0x1054   :  { %v2466_v13 = vpop.eup %2465 }
0x1055   :  { %v1577_v18 = vpack.c.bf16 %v2466_v13, %v2464_v16 }
0x1057   :  { %1585 = vmatpush.bf16.msra.mxu0 %v1577_v18  ;;  %v1747_v18 = vpop.permute.xlu0 %1746 }
0x105a   :  { %2251 = vmatmul.msk.bf16.vlgmr.msra.gmra.mxu0 %vm383_vm0, %v3177_v41 }
0x105b   :  { %1701 = vmatpush.bf16.msrb.mxu0 %v3213_v17 }
0x105f   :  { %1702 = vmatpush.bf16.msrb.mxu0 %v3217_v19 }
0x106a   :  { %2272 = vmatmul.msk.bf16.vlgmr.msrb.gmra.mxu0 %vm498_vm3, %v1485_v42  ;;  %v3246_v42 = vld [vmem:[%s3342_s30] ss:$0 sm:$0xff] }
0x10d7   :  { %v1587_v23 = vpop.f32.mrf.mxu0 }
0x10d8   :  { %v1591_v24 = vpack.c.bf16 %v1587_v23, %v1587_v23 }
0x10da   :  { %v1593_v25 = vsel %vm1536_vm10, %v1591_v24, 0 }
0x10db   :  { %1602 = vmatpush.bf16.msrb.mxu1 %v1593_v25 }
0x10de   :  { %2252 = vmatmul.msk.bf16.vlgmr.msrb.gmra.mxu1 %vm1532_vm12, %v3160_v20 }
0x10df   :  { %1765 = vmatpush.bf16.msra.mxu1 %v3163_v21  ;;  %v1589_v26 = vpop.f32.mrf.mxu0  ;;  %v3229_v21 = vld [vmem:[%s3341_s15] ss:$0 sm:$0xff] }
0x10e3   :  { %1766 = vmatpush.bf16.msra.mxu1 %v3166_v22 }
0x10e7   :  { %v1704_v27 = vpop.f32.mrf.mxu0 }
0x10e8   :  { %v1705_v35 = vadd.f32 %v3229_v21, %v1704_v27 }
0x10ef   :  { %v1706_v28 = vpop.f32.mrf.mxu0 }
0x115b   :  { %v1604_v29 = vpop.f32.mrf.mxu1 }
0x115c   :  { %2467 = vrcp.f32 %v1604_v29 }
0x1162   :  { %v2468_v30 = vpop.eup %2467 }
0x1163   :  { %v1606_v31 = vpop.f32.mrf.mxu1  ;;  %v1611_v32 = vmul.f32 %v2468_v30, %v2464_v16 }
0x1164   :  { %2469 = vrcp.f32 %v1606_v31 }
0x1165   :  { %1615 = vperm.xlu2 %2386, %v1611_v32  }
0x116a   :  { %v2470_v33 = vpop.eup %2469 }
0x116b   :  { %v1612_v49 = vmul.f32 %v2470_v33, %v2466_v13 }
0x116d   :  { %1620 = vperm.xlu2 %2386, %v1612_v49  }
0x1175   :  { %1729 = vrot.lane.b32.xlu2 %v1705_v35, %s2783_s8 }
0x11bf   :  { %v1616_v22 = vpop.permute.xlu2 %1615 }
0x11c0   :  { %v1623_v12 = vmul.f32 %v1616_v22, %v3183_v44 }
0x11c7   :  { %v1621_v37 = vpop.permute.xlu2 %1620 }
0x11c8   :  { %v1624_v43 = vmul.f32 %v1621_v37, %v3185_v38 }
0x11ca   :  { %v1625_v39 = vpack.c.bf16 %v1624_v43, %v1623_v12 }
0x11cc   :  { %1636 = vmatpush.bf16.msrb.mxu2 %v1625_v39 }
0x11cf   :  { %2253 = vmatmul.msk.bf16.vlgmr.msrb.gmra.mxu2 %vm383_vm0, %v3177_v41  ;;  %v1730_v6 = vpop.permute.xlu2 %1729 }
0x11d0   :  { %1782 = vmatpush.bf16.msra.mxu2 %v3193_v46 }
0x11d4   :  { %1783 = vmatpush.bf16.msra.mxu2 %v3197_v47 }
0x1252   :  { %v1638_v45 = vpop.f32.mrf.mxu2 }
0x1253   :  { %v1639_v48 = vadd.f32 %v3246_v42, %v1638_v45 }
0x1255   :  { %v1643_v46 = vmin.f32 %v1639_v48, 0.0  ;;  %vm1642_vm15 = vcmp.gt.f32.partialorder %v1639_v48, 0.0 }
0x1257   :  { %v1644_v50 = vmul.f32 1.442695, %v1643_v46 }
0x1259   :  { %2471 = vpow2.f32 %v1644_v50 }
0x125a   :  { %v1640_v51 = vpop.f32.mrf.mxu2 }
0x125f   :  { %v2472_v52 = vpop.eup %2471 }
0x1260   :  { %v2254_v47 = vadd.f32 -1.0, %v2472_v52 }
0x1262   :  { %v1647_v53 = vsel %vm1642_vm15, %v1639_v48, %v2254_v47 }
0x1263   :  { %v1648_v54 = vpack.c.bf16 %v1647_v53, %v1647_v53 }
0x1265   :  { %2263 = vmatmul.msk.bf16.vlgmr.msrb.gmra.mxu3 %vm498_vm3, %v1648_v54 }
0x12e8   :  { %v1676_v57 = vpop.f32.mrf.mxu3 }
0x12e9   :  { %v1677_v58 = vadd.f32 %v3251_v55, %v1676_v57 }
0x12eb   :  { %v1708_v59 = vadd.f32 %v1705_v35, %v1677_v58 }
0x12ed   :  { %v2273_v61 = vmul.f32 -1.442695, %v1708_v59 }
0x12ef   :  { %2473 = vpow2.f32 %v2273_v61 }
0x12f0   :  { %v1678_v34 = vpop.f32.mrf.mxu3 }
0x12f5   :  { %v2474_v62 = vpop.eup %2473 }
0x12f6   :  { %v1712_v36 = vadd.f32 1.0, %v2474_v62 }
0x12f8   :  { %2475 = vrcp.f32 %v1712_v36  ;;  %v1724_v2 = vand.u32 2147483648, %v1712_v36  ;;  %v1722_v15 = vand.u32 2147483647, %v1712_v36  ;;  %vm1718_vm2 = vweird.f32 %v1712_v36 }
0x12fa   :  { %v1725_v4 = vor.u32 1.1754944e-38, %v1724_v2  ;;  %vm1723_vm5 = vcmp.eq.f32.partialorder %v1722_v15, 8.507059e+37 }
0x12fe   :  { %v2476_v63 = vpop.eup %2475 }
0x12ff   :  { %v1714_v14 = vmul.f32 %v2476_v63, %v1712_v36  ;;  %vm1719_vm1 = vweird.f32 %v2476_v63 }
0x1300   :  { %vm1720_vm4 = vmor %vm1718_vm2, %vm1719_vm1 }
0x1301   :  { %v1715_v0 = vsub.f32 1.0, %v1714_v14 }
0x1303   :  { %v1716_v3 = vmul.f32 %v2476_v63, %v1715_v0 }
0x1305   :  { %v1717_v1 = vadd.f32 %v2476_v63, %v1716_v3 }
0x1307   :  { %v1721_v5 = vsel %vm1720_vm4, %v2476_v63, %v1717_v1 }
0x1308   :  { %v1726_v7 = vsel %vm1723_vm5, %v1725_v4, %v1721_v5 }
0x1309   :  { %v1732_v8 = vmul.f32 %v1730_v6, %v1726_v7  ;;  %v1739_v13 = vsub.f32 1.0, %v1726_v7  ;;  %v1749_v24 = vmul.f32 %v1747_v18, %v1726_v7 }
0x130b   :  { %1734 = vrot.lane.b32.xlu2 %v1732_v8, %s2783_s8 }
0x1365   :  { %v1735_v9 = vpop.permute.xlu2 %1734 }
0x1366   :  { %v1737_v10 = vadd.f32 %v1735_v9, %v1677_v58 }
0x1368   :  { %2477 = vtanh.f32 %v1737_v10 }
0x136e   :  { %v2478_v16 = vpop.eup %2477 }
0x136f   :  { %1741 = vrot.lane.b32.xlu2 %v2478_v16, %s2793_s6 }
0x13c9   :  { %v1742_v23 = vpop.permute.xlu2 %1741 }
0x13ca   :  { %v1744_v25 = vmul.f32 %v1742_v23, %v1739_v13 }
0x13cc   :  { %v1750_v26 = vadd.f32 %v1749_v24, %v1744_v25 }
0x13ce   :  { %v3256_v27 = vmax.f32 %v1750_v26, 0.0 }
0x13d0   :  { %v1752_v28 = vpack.c.bf16 %v3256_v27, %v3256_v27 }
0x13d2   :  { %1754 = vrot.lane.b32.xlu2 %v1752_v28, %s2793_s6 }
0x142c   :  { %v1755_v29 = vpop.permute.xlu2 %1754 }
0x142d   :  { %2274 = vmatmul.msk.bf16.vlgmr.msra.gmra.mxu1 %vm498_vm3, %v1755_v29 }
0x14aa   :  { %v1768_v30 = vpop.f32.mrf.mxu1 }
0x14ab   :  { %v1772_v31 = vpack.c.bf16 %v1768_v30, %v1768_v30 }
0x14ad   :  { %2275 = vmatmul.msk.bf16.vlgmr.msra.gmra.mxu2 %vm498_vm3, %v1772_v31 }
0x14b2   :  { %v1770_v32 = vpop.f32.mrf.mxu1 }
0x1530   :  { %v1785_v33 = vpop.f32.mrf.mxu2 }
0x1531   :  { %v1789_v49 = vpack.c.bf16 %v1785_v33, %v1785_v33 }
0x1533   :  { %v1791_v35 = vsel %vm1536_vm10, %v1789_v49, 0 }
0x1534   :  { %1800 = vmatpush.bf16.msra.mxu3 %v1791_v35 }
0x1537   :  { %2276 = vmatmul.msk.bf16.vlgmr.msra.gmra.mxu3 %vm1532_vm12, %v3160_v20 }
0x1538   :  { %1908 = vmatpush.bf16.msrb.mxu3 %v3239_v40  ;;  %v1787_v22 = vpop.f32.mrf.mxu2 }
0x153c   :  { %1909 = vmatpush.bf16.msrb.mxu3 %v3242_v11 }
0x15ba   :  { %v1802_v37 = vpop.f32.mrf.mxu3 }
0x15bb   :  { %v1807_v12 = vadd.f32 %v1802_v37, %v3204_v56 }
0x15bd   :  { %v1811_v43 = vmul.f32 0.01, %v1807_v12  ;;  %vm1809_vm6 = vcmp.gt.f32.partialorder %v1807_v12, 0.0 }
0x15bf   :  { %v1813_v48 = vsel %vm1809_vm6, %v1807_v12, %v1811_v43 }
0x15c0   :  { %v1815_v40 = vsel %vm683_vm11, %v1813_v48, -inf }
0x15c2   :  { %v1804_v39 = vpop.f32.mrf.mxu3 }
0x15c3   :  { %v1808_v45 = vadd.f32 %v1804_v39, %v3207_v60 }
0x15c5   :  { %vm1810_vm7 = vcmp.gt.f32.partialorder %v1808_v45, 0.0  ;;  %v1812_v46 = vmul.f32 0.01, %v1808_v45 }
0x15c7   :  { %v1814_v50 = vsel %vm1810_vm7, %v1808_v45, %v1812_v46 }
0x15c8   :  { %v1816_v51 = vsel %vm683_vm11, %v1814_v50, -inf }
0x15c9   :  { %v1817_v52 = vmax.f32 %v1815_v40, %v1816_v51 }
0x15cb   :  { %v1818_v47 = vrot.slane %v1817_v52, 4 }
0x15cd   :  { %v1819_v53 = vmax.f32 %v1817_v52, %v1818_v47  ;;  %v2324_v52 = vld [vmem:[%s3344_s12 + $0x8] sm:$0xff]  ;;  %v2323_v47 = vld [vmem:[%s3344_s12] sm:$0xff] }
0x15cf   :  { %v1820_v11 = vrot.slane %v1819_v53, 2 }
0x15d1   :  { %v1821_v54 = vmax.f32 %v1819_v53, %v1820_v11 }
0x15d3   :  { %v1822_v57 = vrot.slane %v1821_v54, 1 }
0x15d5   :  { %v1823_v56 = vmax.f32 %v1821_v54, %v1822_v57 }
0x15d7   :  { %v1824_v58 = vsub.f32 %v1813_v48, %v1823_v56  ;;  %v1825_v59 = vsub.f32 %v1814_v50, %v1823_v56 }
0x15d9   :  { %v1826_v61 = vmul.f32 1.442695, %v1824_v58  ;;  %v1828_v34 = vmul.f32 1.442695, %v1825_v59 }
0x15db   :  { %2479 = vpow2.f32 %v1826_v61 }
0x15dc   :  { %2481 = vpow2.f32 %v1828_v34  ;;  %v2398_v34 = vld [vmem:[%s3345_s29] ss:$0 sm:$0xff] }
0x15e1   :  { %v2480_v60 = vpop.eup %2479 }
0x15e2   :  { %v2482_v62 = vpop.eup %2481 }
0x15e3   :  { %v1830_v36 = vpack.c.bf16 %v2482_v62, %v2480_v60 }
0x15e5   :  { %1838 = vmatpush.bf16.msra.mxu0 %v1830_v36 }
0x15e8   :  { %2277 = vmatmul.msk.bf16.vlgmr.msra.gmra.mxu0 %vm383_vm0, %v3177_v41 }
0x15e9   :  { %1921 = vmatpush.bf16.msrb.mxu0 %v3213_v17 }
0x15ed   :  { %1922 = vmatpush.bf16.msrb.mxu0 %v3217_v19 }
0x15f8   :  { %2282 = vmatmul.msk.bf16.vlgmr.msrb.gmra.mxu0 %vm498_vm3, %v1755_v29 }
0x1665   :  { %v1840_v63 = vpop.f32.mrf.mxu0 }
0x1666   :  { %v1844_v14 = vpack.c.bf16 %v1840_v63, %v1840_v63 }
0x1668   :  { %v1846_v0 = vsel %vm1536_vm10, %v1844_v14, 0 }
0x1669   :  { %1855 = vmatpush.bf16.msrb.mxu1 %v1846_v0 }
0x166c   :  { %2278 = vmatmul.msk.bf16.vlgmr.msrb.gmra.mxu1 %vm1532_vm12, %v3160_v20 }
0x166d   :  { %v1842_v2 = vpop.f32.mrf.mxu0  ;;  %1996 = vmatpush.bf16.msra.mxu1 %v2324_v52 }
0x1671   :  { %1997 = vmatpush.bf16.msra.mxu1 %v2323_v47 }
0x1675   :  { %v1924_v3 = vpop.f32.mrf.mxu0 }
0x1676   :  { %v1925_v15 = vadd.f32 %v3229_v21, %v1924_v3 }
0x1678   :  { %1949 = vrot.lane.b32.xlu1 %v1925_v15, %s2783_s8 }
0x167d   :  { %v1926_v17 = vpop.f32.mrf.mxu0 }
0x16e9   :  { %v1857_v1 = vpop.f32.mrf.mxu1 }
0x16ea   :  { %2483 = vrcp.f32 %v1857_v1  ;;  %v1950_v45 = vpop.permute.xlu1 %1949 }
0x16f0   :  { %v2484_v19 = vpop.eup %2483 }
0x16f1   :  { %v1859_v4 = vpop.f32.mrf.mxu1  ;;  %v1864_v5 = vmul.f32 %v2484_v19, %v2480_v60 }
0x16f2   :  { %2485 = vrcp.f32 %v1859_v4 }
0x16f3   :  { %1868 = vperm.xlu0 %2387, %v1864_v5  }
0x16f8   :  { %v2486_v6 = vpop.eup %2485 }
0x16f9   :  { %v1865_v7 = vmul.f32 %v2486_v6, %v2482_v62 }
0x16fb   :  { %1873 = vperm.xlu2 %2386, %v1865_v7  }
0x1755   :  { %v1874_v8 = vpop.permute.xlu2 %1873 }
0x1756   :  { %v1877_v20 = vmul.f32 %v1874_v8, %v3185_v38 }
0x1765   :  { %v1869_v9 = vpop.permute.xlu0 %1868 }
0x1766   :  { %v1876_v10 = vmul.f32 %v1869_v9, %v3183_v44 }
0x1768   :  { %v1878_v21 = vpack.c.bf16 %v1877_v20, %v1876_v10 }
0x176a   :  { %1886 = vmatpush.bf16.msrb.mxu2 %v1878_v21 }
0x176d   :  { %2279 = vmatmul.msk.bf16.vlgmr.msrb.gmra.mxu2 %vm383_vm0, %v3177_v41 }
0x17f0   :  { %v1888_v16 = vpop.f32.mrf.mxu2 }
0x17f1   :  { %v1889_v13 = vadd.f32 %v3246_v42, %v1888_v16 }
0x17f3   :  { %v1893_v18 = vmin.f32 %v1889_v13, 0.0  ;;  %vm1892_vm11 = vcmp.gt.f32.partialorder %v1889_v13, 0.0 }
0x17f5   :  { %v1894_v23 = vmul.f32 1.442695, %v1893_v18 }
0x17f7   :  { %2487 = vpow2.f32 %v1894_v23 }
0x17f8   :  { %v1890_v24 = vpop.f32.mrf.mxu2 }
0x17fd   :  { %v2488_v25 = vpop.eup %2487 }
0x17fe   :  { %v2280_v26 = vadd.f32 -1.0, %v2488_v25 }
0x1800   :  { %v1897_v28 = vsel %vm1892_vm11, %v1889_v13, %v2280_v26 }
0x1801   :  { %v1898_v29 = vpack.c.bf16 %v1897_v28, %v1897_v28 }
0x1803   :  { %2281 = vmatmul.msk.bf16.vlgmr.msrb.gmra.mxu3 %vm498_vm3, %v1898_v29 }
0x1886   :  { %v1911_v44 = vpop.f32.mrf.mxu3 }
0x1887   :  { %v1912_v38 = vadd.f32 %v3251_v55, %v1911_v44 }
0x1889   :  { %v1928_v30 = vadd.f32 %v1925_v15, %v1912_v38 }
0x188b   :  { %v2283_v31 = vmul.f32 -1.442695, %v1928_v30 }
0x188d   :  { %2489 = vpow2.f32 %v2283_v31 }
0x188e   :  { %v1913_v41 = vpop.f32.mrf.mxu3 }
0x1893   :  { %v2490_v32 = vpop.eup %2489 }
0x1894   :  { %v1932_v42 = vadd.f32 1.0, %v2490_v32 }
0x1896   :  { %2491 = vrcp.f32 %v1932_v42  ;;  %v1944_v22 = vand.u32 2147483648, %v1932_v42  ;;  %v1942_v12 = vand.u32 2147483647, %v1932_v42  ;;  %vm1938_vm8 = vweird.f32 %v1932_v42 }
0x1898   :  { %v1945_v55 = vor.u32 1.1754944e-38, %v1944_v22  ;;  %vm1943_vm10 = vcmp.eq.f32.partialorder %v1942_v12, 8.507059e+37 }
0x189c   :  { %v2492_v33 = vpop.eup %2491 }
0x189d   :  { %v1934_v49 = vmul.f32 %v2492_v33, %v1932_v42  ;;  %vm1939_vm0 = vweird.f32 %v2492_v33 }
0x189e   :  { %vm1940_vm9 = vmor %vm1938_vm8, %vm1939_vm0 }
0x189f   :  { %v1935_v35 = vsub.f32 1.0, %v1934_v49 }
0x18a1   :  { %v1936_v37 = vmul.f32 %v2492_v33, %v1935_v35 }
0x18a3   :  { %v1937_v43 = vadd.f32 %v2492_v33, %v1936_v37 }
0x18a5   :  { %v1941_v39 = vsel %vm1940_vm9, %v2492_v33, %v1937_v43 }
0x18a6   :  { %v1946_v48 = vsel %vm1943_vm10, %v1945_v55, %v1941_v39 }
0x18a7   :  { %v1952_v46 = vmul.f32 %v1950_v45, %v1946_v48  ;;  %v1959_v53 = vsub.f32 1.0, %v1946_v48  ;;  %v1965_v54 = vmul.f32 %v1946_v48, %v3256_v27 }
0x18a9   :  { %1954 = vrot.lane.b32.xlu2 %v1952_v46, %s2783_s8  ;;  %s2796_s8 = smov [#allocation17]  }
0x18aa   :  { %s2009_s18 = sshll.u32 %s2796_s8, 4  ;;  %s2010_s18 = int_to_ptr.vmem [resolvable:$true] %s2009_s18 }
0x1903   :  { %v1955_v50 = vpop.permute.xlu2 %1954 }
0x1904   :  { %v1957_v40 = vadd.f32 %v1955_v50, %v1912_v38 }
0x1906   :  { %2493 = vtanh.f32 %v1957_v40 }
0x190c   :  { %v2494_v51 = vpop.eup %2493 }
0x190d   :  { %1961 = vrot.lane.b32.xlu0 %v2494_v51, %s2793_s6 }
0x197f   :  { %v1962_v11 = vpop.permute.xlu0 %1961 }
0x1980   :  { %v1964_v57 = vmul.f32 %v1962_v11, %v1959_v53 }
0x1982   :  { %v1966_v56 = vadd.f32 %v1965_v54, %v1964_v57 }
0x1984   :  { %v1967_v58 = vmax.f32 %v1966_v56, 0.0 }
0x1986   :  { %v1968_v59 = vpack.c.bf16 %v1967_v58, %v1967_v58 }
0x1988   :  { %1973 = vrot.lane.b32.xlu2 %v1968_v59, %s2793_s6 }
0x19e2   :  { %v1974_v61 = vpop.permute.xlu2 %1973 }
0x19e3   :  { %2292 = vmatmul.msk.bf16.vlgmr.msra.gmra.mxu1 %vm498_vm3, %v1974_v61 }
0x1a60   :  { %v1999_v60 = vpop.f32.mrf.mxu1 }
0x1a61   :  { %v2000_v62 = vadd.f32 %v2398_v34, %v1999_v60 }
0x1a63   :  { %2003 = vst [vmem:[#allocation17] sm:$0x3] %v2000_v62 }
0x1a64   :  { %2734 = shalt.err (!%p2731_p7)
}
0x1a65   :  { %2014 = dma.vmem_to_hbm [thread:$0]  %s2010_s18, 32, %s2012_s23, [#allocation4]  }
0x1a68   :  { %v2001_v27 = vpop.f32.mrf.mxu1 }
0x1a69   :  { %2745 = dma.done.wait [#allocation4], 32  }
0x1a6a   :  { %2746 = vsyncadd [#allocation4], 4294967264 }
0x1a6b   :  { %2019 = vsyncpa [#allocation3], 1 }
0x1a6c   :  { %2020 = vsyncpa [#allocation6], 1 }
0x1a6d   :  { %2021 = vsyncpa [#allocation9], 1 }
0x1a6e   :  { %2022 = vsyncpa [#allocation12], 1 }
0x1a6f   :  { %2023 = vsyncpa [#allocation15], 1 }
0x1a70   :  { %2024 = vsyncpa [#allocation4], 1 }

</bundles_post_ra>
